<compile_context>
chip_gen: v6e
topology: v6e:2x2x1
jax: 0.10.0
libtpu: 0.0.40
codegen_flags: <defaults>
</compile_context>

<pallas_src>
import functools

import jax
import jax.numpy as jnp
from jax.experimental import pallas as pl
from jax.experimental.pallas import tpu as pltpu


# ----------------------------------------------------------------------------
# Pallas kernels
# ----------------------------------------------------------------------------
def _bilstm_layer_kernel(x_ref, wih_ref, whh_ref, b_ref, out_ref,
                         gx_scr, h_scr, c_scr):
    """One direction of a bidirectional LSTM layer over one time chunk.

    Grid: (direction, time_chunk).

    x_ref  : (P, TC*B, Dp)  chunk of layer input; P pieces along the leading
                            axis (P=1 for the first layer, P=2 = fwd/bwd
                            halves of the previous layer's output)
    wih_ref: (1, P*Dp, 4H)  input->gate weights of this direction (bf16)
    whh_ref: (1, H, 4H)     hidden->gate weights of this direction (bf16)
    b_ref  : (1, 1, 4H)     combined bias b_ih + b_hh (f32)
    out_ref: (1, TC*B, H)   hidden sequence of this direction for this chunk
    gx_scr : (TC*B, 4H) f32 hoisted input projection (+bias) for the chunk
    h_scr  : (B, H) f32     hidden state carried across time chunks
    c_scr  : (B, H) f32     cell state carried across time chunks
    """
    d = pl.program_id(0)          # 0 = forward, 1 = backward (reversed time)
    c = pl.program_id(1)          # time-chunk index within this direction

    P, tcb, dp = x_ref.shape
    B, H = h_scr.shape
    TC = tcb // B                 # time steps in this chunk

    @pl.when(c == 0)
    def _():                      # fresh state at the start of each direction
        h_scr[...] = jnp.zeros_like(h_scr)
        c_scr[...] = jnp.zeros_like(c_scr)

    # --- hoisted input projection: one big MXU matmul per chunk, bias folded
    #     in once (not once per time step).
    acc = jnp.dot(x_ref[0].astype(jnp.bfloat16),
                  wih_ref[0, 0:dp, :],
                  preferred_element_type=jnp.float32)
    for p in range(1, P):
        acc = acc + jnp.dot(x_ref[p].astype(jnp.bfloat16),
                            wih_ref[0, p * dp:(p + 1) * dp, :],
                            preferred_element_type=jnp.float32)
    gx_scr[...] = acc + b_ref[0]                      # (TC*B, 4H) f32

    whh = whh_ref[0]                                  # (H, 4H) bf16, resident

    # --- serial recurrence: only h @ W_hh + gate math per step (f32 math).
    def step(s, carry):
        h, cell = carry
        li = s + d * (TC - 1 - 2 * s)                 # fwd: s   bwd: TC-1-s
        row = li * B
        gates = gx_scr[pl.ds(row, B), :] + jnp.dot(
            h.astype(jnp.bfloat16), whh, preferred_element_type=jnp.float32)
        i_g = jax.nn.sigmoid(gates[:, 0:H])
        f_g = jax.nn.sigmoid(gates[:, H:2 * H])
        g_g = jnp.tanh(gates[:, 2 * H:3 * H])
        o_g = jax.nn.sigmoid(gates[:, 3 * H:4 * H])
        cell_new = f_g * cell + i_g * g_g             # f32 cell accumulation
        h_new = o_g * jnp.tanh(cell_new)
        out_ref[0, pl.ds(row, B), :] = h_new
        return h_new, cell_new

    h_fin, c_fin = jax.lax.fori_loop(
        0, TC, step, (h_scr[...], c_scr[...]), unroll=(TC <= 16))
    h_scr[...] = h_fin
    c_scr[...] = c_fin


def _head_kernel(hf_ref, hb_ref, w_ref, b_ref, o_ref):
    """y = [h_fwd | h_bwd] @ W^T + b, expressed as a piece-sum (no concat)."""
    H = hf_ref.shape[1]
    acc = jnp.dot(hf_ref[...], w_ref[0:H, :], preferred_element_type=jnp.float32)
    acc = acc + jnp.dot(hb_ref[...], w_ref[H:, :],
                        preferred_element_type=jnp.float32)
    o_ref[...] = acc + b_ref[...]


# ----------------------------------------------------------------------------
# pallas_call wrappers
# ----------------------------------------------------------------------------
_VMEM_SPEC = pl.BlockSpec(memory_space=pltpu.MemorySpace.VMEM)


def _pick_time_chunk(seq_len, batch, d_in, hidden, budget_bytes=2 << 20):
    """Largest time chunk whose per-chunk working set fits a small VMEM budget.

    Chunks must divide seq_len exactly (padded chunks would corrupt the
    recurrence) and keep chunk*batch sublane-aligned (multiple of 8) unless a
    single chunk covers the whole sequence.
    """
    bytes_per_step = 4 * batch * (d_in + 5 * hidden)   # x + gx + hseq rows
    candidates = [t for t in range(1, seq_len + 1)
                  if seq_len % t == 0
                  and (t == seq_len or (t * batch) % 8 == 0)]
    fitting = [t for t in candidates if t * bytes_per_step <= budget_bytes]
    return max(fitting) if fitting else min(candidates)


def run_bilstm_layer(x_pieces, w_ih, w_hh, bias, *, batch, seq_len):
    """x_pieces: (P, T*B, Dp) -> (2, T*B, H): [0]=forward h-seq, [1]=backward."""
    P, TB, dp = x_pieces.shape
    assert TB == batch * seq_len
    H = w_hh.shape[1]
    G = 4 * H

    tc = _pick_time_chunk(seq_len, batch, P * dp, H)
    nc = seq_len // tc
    tcb = tc * batch

    def data_map(d, c):
        # forward walks chunks 0..nc-1; backward walks them in reverse.
        return (0, c + d * (nc - 1 - 2 * c), 0)

    def weight_map(d, c):
        return (d, 0, 0)

    def out_map(d, c):
        return (d, c + d * (nc - 1 - 2 * c), 0)

    return pl.pallas_call(
        _bilstm_layer_kernel,
        out_shape=jax.ShapeDtypeStruct((2, TB, H), jnp.float32),
        grid=(2, nc),
        in_specs=[
            pl.BlockSpec((P, tcb, dp), data_map),
            pl.BlockSpec((1, P * dp, G), weight_map),
            pl.BlockSpec((1, H, G), weight_map),
            pl.BlockSpec((1, 1, G), weight_map),
        ],
        out_specs=pl.BlockSpec((1, tcb, H), out_map),
        scratch_shapes=[
            pltpu.VMEM((tcb, G), jnp.float32),   # hoisted input projection
            pltpu.VMEM((batch, H), jnp.float32),  # h state
            pltpu.VMEM((batch, H), jnp.float32),  # c state
        ],
        compiler_params=pltpu.CompilerParams(
            dimension_semantics=("parallel", "arbitrary"),
            vmem_limit_bytes=32 * 1024 * 1024,
        ),
    )(x_pieces, w_ih, w_hh, bias)


def run_head(h_f, h_b, w_t, bias):
    B = h_f.shape[0]
    O = w_t.shape[1]
    return pl.pallas_call(
        _head_kernel,
        out_shape=jax.ShapeDtypeStruct((B, O), jnp.float32),
        in_specs=[_VMEM_SPEC] * 4,
        out_specs=_VMEM_SPEC,
    )(h_f, h_b, w_t, bias)


# ----------------------------------------------------------------------------
# Parameter initialization (deterministic; mirrors nn.LSTM / nn.Linear shapes)
# ----------------------------------------------------------------------------
def init_xlstm_params(key, input_size, hidden_size, num_layers, output_size):
    H = hidden_size
    k = 1.0 / float(H) ** 0.5
    params = {"layers": []}
    for layer in range(num_layers):
        d_in = input_size if layer == 0 else 2 * H
        wih_dirs, whh_dirs, b_dirs = [], [], []
        for _direction in range(2):  # forward, backward
            key, k1, k2, k3, k4 = jax.random.split(key, 5)
            w_ih = jax.random.uniform(k1, (4 * H, d_in), jnp.float32, -k, k)
            w_hh = jax.random.uniform(k2, (4 * H, H), jnp.float32, -k, k)
            b_ih = jax.random.uniform(k3, (4 * H,), jnp.float32, -k, k)
            b_hh = jax.random.uniform(k4, (4 * H,), jnp.float32, -k, k)
            wih_dirs.append(w_ih.T)                      # (d_in, 4H)
            whh_dirs.append(w_hh.T)                      # (H, 4H)
            b_dirs.append((b_ih + b_hh)[None, :])        # (1, 4H)
        params["layers"].append(dict(
            w_ih=jnp.stack(wih_dirs).astype(jnp.bfloat16),   # (2, d_in, 4H)
            w_hh=jnp.stack(whh_dirs).astype(jnp.bfloat16),   # (2, H, 4H)
            bias=jnp.stack(b_dirs).astype(jnp.float32),      # (2, 1, 4H)
        ))

    kf = 1.0 / float(2 * H) ** 0.5
    key, k1, k2 = jax.random.split(key, 3)
    w_fc = jax.random.uniform(k1, (output_size, 2 * H), jnp.float32, -kf, kf)
    b_fc = jax.random.uniform(k2, (output_size,), jnp.float32, -kf, kf)
    params["fc_w_t"] = w_fc.T            # (2H, O)
    params["fc_b"] = b_fc[None, :]       # (1, O)
    return params


# ----------------------------------------------------------------------------
# Forward pass (matches XLSTM.forward, eval mode)
# ----------------------------------------------------------------------------
@functools.partial(jax.jit, static_argnames=("num_layers",))
def xlstm_forward(x, params, num_layers):
    """x: (B, T, input_size) batch-first, like the PyTorch module."""
    B, T, _ = x.shape
    xt = jnp.transpose(x, (1, 0, 2)).astype(jnp.float32)     # (T, B, D)
    layer_in = xt.reshape(1, T * B, xt.shape[-1])            # (P=1, T*B, D)

    for layer in range(num_layers):
        lp = params["layers"][layer]
        layer_in = run_bilstm_layer(layer_in, lp["w_ih"], lp["w_hh"],
                                    lp["bias"], batch=B, seq_len=T)
        # -> (2, T*B, H): piece 0 = forward hidden seq, piece 1 = backward
        # inter-layer dropout: identity at inference

    h_f_last = layer_in[0, (T - 1) * B:, :]   # forward h at t = T-1   (B, H)
    h_b_last = layer_in[1, (T - 1) * B:, :]   # backward h at t = T-1  (B, H)
    # top-level dropout: identity at inference
    return run_head(h_f_last, h_b_last, params["fc_w_t"], params["fc_b"])


# ----------------------------------------------------------------------------
# Demo
# ----------------------------------------------------------------------------
if __name__ == "__main__":
    INPUT_SIZE = 16
    HIDDEN_SIZE = 32
    NUM_LAYERS = 2
    OUTPUT_SIZE = 4
    BATCH = 2
    SEQ = 8

    root = jax.random.PRNGKey(0)
    k_x, k_p = jax.random.split(root)
    x = jax.random.normal(k_x, (BATCH, SEQ, INPUT_SIZE), jnp.float32)
    params = init_xlstm_params(k_p, INPUT_SIZE, HIDDEN_SIZE, NUM_LAYERS,
                               OUTPUT_SIZE)

    out = xlstm_forward(x, params, NUM_LAYERS)
    out = jax.block_until_ready(out)
    assert out.shape == (BATCH, OUTPUT_SIZE), out.shape
    assert bool(jnp.all(jnp.isfinite(out)))
    print("KERNEL_OK")
</pallas_src>

<mosaic_0001>
module attributes {stable_mosaic.version = 11 : i64} {
  func.func @_bilstm_layer_kernel(%arg0: i32, %arg1: i32, %arg2: memref<2x16x32xf32, #tpu.memory_space<vmem>>, %arg3: memref<1x64x128xbf16, #tpu.memory_space<vmem>>, %arg4: memref<1x32x128xbf16, #tpu.memory_space<vmem>>, %arg5: memref<1x1x128xf32, #tpu.memory_space<vmem>>, %arg6: memref<1x16x32xf32, #tpu.memory_space<vmem>>, %arg7: memref<16x128xf32, #tpu.memory_space<vmem>>, %arg8: memref<2x32xf32, #tpu.memory_space<vmem>>, %arg9: memref<2x32xf32, #tpu.memory_space<vmem>>) attributes {dimension_semantics = [#tpu.dimension_semantics<parallel>, #tpu.dimension_semantics<arbitrary>], iteration_bounds = array<i64: 2, 1>, scalar_prefetch = 0 : i64, scratch_operands = 3 : i64, tpu.core_type = #tpu.core_type<tc>, window_params = [{transform_indices = @transform_0, window_bounds = array<i64: 2, 16, 32>}, {transform_indices = @transform_1, window_bounds = array<i64: 1, 64, 128>}, {transform_indices = @transform_2, window_bounds = array<i64: 1, 32, 128>}, {transform_indices = @transform_3, window_bounds = array<i64: 1, 1, 128>}, {transform_indices = @transform_4, window_bounds = array<i64: 1, 16, 32>}]} {
    %c0_i32 = arith.constant 0 : i32
    %0 = arith.cmpi eq, %arg1, %c0_i32 : i32
    %1 = arith.extui %0 : i1 to i32
    %c0_i32_0 = arith.constant 0 : i32
    %2 = arith.cmpi ne, %1, %c0_i32_0 : i32
    scf.if %2 {
      %cst_108 = arith.constant 0.000000e+00 : f32
      %339 = vector.broadcast %cst_108 : f32 to vector<2x32xf32>
      %c0_109 = arith.constant 0 : index
      %c0_110 = arith.constant 0 : index
      %340 = vector.load %arg8[%c0_109, %c0_110] : memref<2x32xf32, #tpu.memory_space<vmem>>, vector<2x32xf32>
      tpu.vector_store %arg8[%c0_109, %c0_110], %339 {strides = array<i32>} : memref<2x32xf32, #tpu.memory_space<vmem>>, vector<2x32xf32>,
      %cst_111 = arith.constant 0.000000e+00 : f32
      %341 = vector.broadcast %cst_111 : f32 to vector<2x32xf32>
      %c0_112 = arith.constant 0 : index
      %c0_113 = arith.constant 0 : index
      %342 = vector.load %arg9[%c0_112, %c0_113] : memref<2x32xf32, #tpu.memory_space<vmem>>, vector<2x32xf32>
      tpu.vector_store %arg9[%c0_112, %c0_113], %341 {strides = array<i32>} : memref<2x32xf32, #tpu.memory_space<vmem>>, vector<2x32xf32>,
    } else {
    }
    %c0 = arith.constant 0 : index
    %c0_1 = arith.constant 0 : index
    %c0_2 = arith.constant 0 : index
    %3 = vector.load %arg2[%c0, %c0_1, %c0_2] : memref<2x16x32xf32, #tpu.memory_space<vmem>>, vector<1x16x32xf32>
    %4 = vector.shape_cast %3 : vector<1x16x32xf32> to vector<16x32xf32>
    %5 = arith.truncf %4 : vector<16x32xf32> to vector<16x32xbf16>
    %c0_3 = arith.constant 0 : index
    %c0_4 = arith.constant 0 : index
    %c0_5 = arith.constant 0 : index
    %6 = vector.load %arg3[%c0_3, %c0_4, %c0_5] : memref<1x64x128xbf16, #tpu.memory_space<vmem>>, vector<1x32x128xbf16>
    %7 = vector.shape_cast %6 : vector<1x32x128xbf16> to vector<32x128xbf16>
    %cst = arith.constant dense<0.000000e+00> : vector<16x128xf32>
    %8 = tpu.matmul %5, %7, %cst {dimension_numbers = #tpu.dot_dimension_numbers<[1], [0], [0], [1], [0, 0, 1, 1], [], []>} : vector<16x32xbf16>, vector<32x128xbf16>, vector<16x128xf32> -> vector<16x128xf32>
    %c1 = arith.constant 1 : index
    %c0_6 = arith.constant 0 : index
    %c0_7 = arith.constant 0 : index
    %9 = vector.load %arg2[%c1, %c0_6, %c0_7] : memref<2x16x32xf32, #tpu.memory_space<vmem>>, vector<1x16x32xf32>
    %10 = vector.shape_cast %9 : vector<1x16x32xf32> to vector<16x32xf32>
    %11 = arith.truncf %10 : vector<16x32xf32> to vector<16x32xbf16>
    %c0_8 = arith.constant 0 : index
    %c32 = arith.constant 32 : index
    %c0_9 = arith.constant 0 : index
    %12 = vector.load %arg3[%c0_8, %c32, %c0_9] : memref<1x64x128xbf16, #tpu.memory_space<vmem>>, vector<1x32x128xbf16>
    %13 = vector.shape_cast %12 : vector<1x32x128xbf16> to vector<32x128xbf16>
    %cst_10 = arith.constant dense<0.000000e+00> : vector<16x128xf32>
    %14 = tpu.matmul %11, %13, %cst_10 {dimension_numbers = #tpu.dot_dimension_numbers<[1], [0], [0], [1], [0, 0, 1, 1], [], []>} : vector<16x32xbf16>, vector<32x128xbf16>, vector<16x128xf32> -> vector<16x128xf32>
    %15 = arith.addf %8, %14 : vector<16x128xf32>
    %c0_11 = arith.constant 0 : index
    %c0_12 = arith.constant 0 : index
    %c0_13 = arith.constant 0 : index
    %16 = vector.load %arg5[%c0_11, %c0_12, %c0_13] : memref<1x1x128xf32, #tpu.memory_space<vmem>>, vector<1x1x128xf32>
    %17 = vector.shape_cast %16 : vector<1x1x128xf32> to vector<1x128xf32>
    %18 = vector.broadcast %17 : vector<1x128xf32> to vector<16x128xf32>
    %19 = arith.addf %15, %18 : vector<16x128xf32>
    %c0_14 = arith.constant 0 : index
    %c0_15 = arith.constant 0 : index
    %20 = vector.load %arg7[%c0_14, %c0_15] : memref<16x128xf32, #tpu.memory_space<vmem>>, vector<16x128xf32>
    tpu.vector_store %arg7[%c0_14, %c0_15], %19 {strides = array<i32>} : memref<16x128xf32, #tpu.memory_space<vmem>>, vector<16x128xf32>,
    %c0_16 = arith.constant 0 : index
    %c0_17 = arith.constant 0 : index
    %c0_18 = arith.constant 0 : index
    %21 = vector.load %arg4[%c0_16, %c0_17, %c0_18] : memref<1x32x128xbf16, #tpu.memory_space<vmem>>, vector<1x32x128xbf16>
    %22 = vector.shape_cast %21 : vector<1x32x128xbf16> to vector<32x128xbf16>
    %c0_19 = arith.constant 0 : index
    %c0_20 = arith.constant 0 : index
    %23 = vector.load %arg8[%c0_19, %c0_20] : memref<2x32xf32, #tpu.memory_space<vmem>>, vector<2x32xf32>
    %c0_21 = arith.constant 0 : index
    %c0_22 = arith.constant 0 : index
    %24 = vector.load %arg9[%c0_21, %c0_22] : memref<2x32xf32, #tpu.memory_space<vmem>>, vector<2x32xf32>
    %c0_i32_23 = arith.constant 0 : i32
    %c2_i32 = arith.constant 2 : i32
    %25 = arith.muli %c2_i32, %c0_i32_23 : i32
    %c7_i32 = arith.constant 7 : i32
    %26 = arith.subi %c7_i32, %25 : i32
    %27 = arith.muli %arg0, %26 : i32
    %28 = arith.addi %c0_i32_23, %27 : i32
    %c2_i32_24 = arith.constant 2 : i32
    %29 = arith.muli %28, %c2_i32_24 : i32
    %30 = arith.index_cast %29 : i32 to index
    %c0_25 = arith.constant 0 : index
    %31 = vector.load %arg7[%30, %c0_25] : memref<16x128xf32, #tpu.memory_space<vmem>>, vector<2x128xf32>
    %32 = arith.truncf %23 : vector<2x32xf32> to vector<2x32xbf16>
    %cst_26 = arith.constant dense<0.000000e+00> : vector<2x128xf32>
    %33 = tpu.matmul %32, %22, %cst_26 {dimension_numbers = #tpu.dot_dimension_numbers<[1], [0], [0], [1], [0, 0, 1, 1], [], []>} : vector<2x32xbf16>, vector<32x128xbf16>, vector<2x128xf32> -> vector<2x128xf32>
    %34 = arith.addf %31, %33 : vector<2x128xf32>
    %35 = vector.extract_strided_slice %34 {offsets = [0, 0], sizes = [2, 32], strides = [1, 1]} : vector<2x128xf32> to vector<2x32xf32>
    %36 = arith.negf %35 : vector<2x32xf32>
    %37 = math.exp %36 : vector<2x32xf32>
    %cst_27 = arith.constant 1.000000e+00 : f32
    %38 = vector.broadcast %cst_27 : f32 to vector<2x32xf32>
    %39 = arith.addf %38, %37 : vector<2x32xf32>
    %40 = arith.divf %38, %39 : vector<2x32xf32>
    %41 = vector.extract_strided_slice %34 {offsets = [0, 32], sizes = [2, 32], strides = [1, 1]} : vector<2x128xf32> to vector<2x32xf32>
    %42 = arith.negf %41 : vector<2x32xf32>
    %43 = math.exp %42 : vector<2x32xf32>
    %cst_28 = arith.constant 1.000000e+00 : f32
    %44 = vector.broadcast %cst_28 : f32 to vector<2x32xf32>
    %45 = arith.addf %44, %43 : vector<2x32xf32>
    %46 = arith.divf %44, %45 : vector<2x32xf32>
    %47 = vector.extract_strided_slice %34 {offsets = [0, 64], sizes = [2, 32], strides = [1, 1]} : vector<2x128xf32> to vector<2x32xf32>
    %48 = math.tanh %47 : vector<2x32xf32>
    %49 = vector.extract_strided_slice %34 {offsets = [0, 96], sizes = [2, 32], strides = [1, 1]} : vector<2x128xf32> to vector<2x32xf32>
    %50 = arith.negf %49 : vector<2x32xf32>
    %51 = math.exp %50 : vector<2x32xf32>
    %cst_29 = arith.constant 1.000000e+00 : f32
    %52 = vector.broadcast %cst_29 : f32 to vector<2x32xf32>
    %53 = arith.addf %52, %51 : vector<2x32xf32>
    %54 = arith.divf %52, %53 : vector<2x32xf32>
    %55 = arith.mulf %46, %24 : vector<2x32xf32>
    %56 = arith.mulf %40, %48 : vector<2x32xf32>
    %57 = arith.addf %55, %56 : vector<2x32xf32>
    %58 = math.tanh %57 : vector<2x32xf32>
    %59 = arith.mulf %54, %58 : vector<2x32xf32>
    %c0_30 = arith.constant 0 : index
    %60 = arith.index_cast %29 : i32 to index
    %c0_31 = arith.constant 0 : index
    %61 = vector.load %arg6[%c0_30, %60, %c0_31] : memref<1x16x32xf32, #tpu.memory_space<vmem>>, vector<1x2x32xf32>
    %62 = vector.shape_cast %61 : vector<1x2x32xf32> to vector<2x32xf32>
    %63 = vector.shape_cast %59 : vector<2x32xf32> to vector<1x2x32xf32>
    tpu.vector_store %arg6[%c0_30, %60, %c0_31], %63 {strides = array<i32>} : memref<1x16x32xf32, #tpu.memory_space<vmem>>, vector<1x2x32xf32>,
    %c1_i32 = arith.constant 1 : i32
    %c2_i32_32 = arith.constant 2 : i32
    %64 = arith.muli %c2_i32_32, %c1_i32 : i32
    %c7_i32_33 = arith.constant 7 : i32
    %65 = arith.subi %c7_i32_33, %64 : i32
    %66 = arith.muli %arg0, %65 : i32
    %67 = arith.addi %c1_i32, %66 : i32
    %c2_i32_34 = arith.constant 2 : i32
    %68 = arith.muli %67, %c2_i32_34 : i32
    %69 = arith.index_cast %68 : i32 to index
    %c0_35 = arith.constant 0 : index
    %70 = vector.load %arg7[%69, %c0_35] : memref<16x128xf32, #tpu.memory_space<vmem>>, vector<2x128xf32>
    %71 = arith.truncf %59 : vector<2x32xf32> to vector<2x32xbf16>
    %cst_36 = arith.constant dense<0.000000e+00> : vector<2x128xf32>
    %72 = tpu.matmul %71, %22, %cst_36 {dimension_numbers = #tpu.dot_dimension_numbers<[1], [0], [0], [1], [0, 0, 1, 1], [], []>} : vector<2x32xbf16>, vector<32x128xbf16>, vector<2x128xf32> -> vector<2x128xf32>
    %73 = arith.addf %70, %72 : vector<2x128xf32>
    %74 = vector.extract_strided_slice %73 {offsets = [0, 0], sizes = [2, 32], strides = [1, 1]} : vector<2x128xf32> to vector<2x32xf32>
    %75 = arith.negf %74 : vector<2x32xf32>
    %76 = math.exp %75 : vector<2x32xf32>
    %cst_37 = arith.constant 1.000000e+00 : f32
    %77 = vector.broadcast %cst_37 : f32 to vector<2x32xf32>
    %78 = arith.addf %77, %76 : vector<2x32xf32>
    %79 = arith.divf %77, %78 : vector<2x32xf32>
    %80 = vector.extract_strided_slice %73 {offsets = [0, 32], sizes = [2, 32], strides = [1, 1]} : vector<2x128xf32> to vector<2x32xf32>
    %81 = arith.negf %80 : vector<2x32xf32>
    %82 = math.exp %81 : vector<2x32xf32>
    %cst_38 = arith.constant 1.000000e+00 : f32
    %83 = vector.broadcast %cst_38 : f32 to vector<2x32xf32>
    %84 = arith.addf %83, %82 : vector<2x32xf32>
    %85 = arith.divf %83, %84 : vector<2x32xf32>
    %86 = vector.extract_strided_slice %73 {offsets = [0, 64], sizes = [2, 32], strides = [1, 1]} : vector<2x128xf32> to vector<2x32xf32>
    %87 = math.tanh %86 : vector<2x32xf32>
    %88 = vector.extract_strided_slice %73 {offsets = [0, 96], sizes = [2, 32], strides = [1, 1]} : vector<2x128xf32> to vector<2x32xf32>
    %89 = arith.negf %88 : vector<2x32xf32>
    %90 = math.exp %89 : vector<2x32xf32>
    %cst_39 = arith.constant 1.000000e+00 : f32
    %91 = vector.broadcast %cst_39 : f32 to vector<2x32xf32>
    %92 = arith.addf %91, %90 : vector<2x32xf32>
    %93 = arith.divf %91, %92 : vector<2x32xf32>
    %94 = arith.mulf %85, %57 : vector<2x32xf32>
    %95 = arith.mulf %79, %87 : vector<2x32xf32>
    %96 = arith.addf %94, %95 : vector<2x32xf32>
    %97 = math.tanh %96 : vector<2x32xf32>
    %98 = arith.mulf %93, %97 : vector<2x32xf32>
    %c0_40 = arith.constant 0 : index
    %99 = arith.index_cast %68 : i32 to index
    %c0_41 = arith.constant 0 : index
    %100 = vector.load %arg6[%c0_40, %99, %c0_41] : memref<1x16x32xf32, #tpu.memory_space<vmem>>, vector<1x2x32xf32>
    %101 = vector.shape_cast %100 : vector<1x2x32xf32> to vector<2x32xf32>
    %102 = vector.shape_cast %98 : vector<2x32xf32> to vector<1x2x32xf32>
    tpu.vector_store %arg6[%c0_40, %99, %c0_41], %102 {strides = array<i32>} : memref<1x16x32xf32, #tpu.memory_space<vmem>>, vector<1x2x32xf32>,
    %c2_i32_42 = arith.constant 2 : i32
    %c2_i32_43 = arith.constant 2 : i32
    %103 = arith.muli %c2_i32_43, %c2_i32_42 : i32
    %c7_i32_44 = arith.constant 7 : i32
    %104 = arith.subi %c7_i32_44, %103 : i32
    %105 = arith.muli %arg0, %104 : i32
    %106 = arith.addi %c2_i32_42, %105 : i32
    %c2_i32_45 = arith.constant 2 : i32
    %107 = arith.muli %106, %c2_i32_45 : i32
    %108 = arith.index_cast %107 : i32 to index
    %c0_46 = arith.constant 0 : index
    %109 = vector.load %arg7[%108, %c0_46] : memref<16x128xf32, #tpu.memory_space<vmem>>, vector<2x128xf32>
    %110 = arith.truncf %98 : vector<2x32xf32> to vector<2x32xbf16>
    %cst_47 = arith.constant dense<0.000000e+00> : vector<2x128xf32>
    %111 = tpu.matmul %110, %22, %cst_47 {dimension_numbers = #tpu.dot_dimension_numbers<[1], [0], [0], [1], [0, 0, 1, 1], [], []>} : vector<2x32xbf16>, vector<32x128xbf16>, vector<2x128xf32> -> vector<2x128xf32>
    %112 = arith.addf %109, %111 : vector<2x128xf32>
    %113 = vector.extract_strided_slice %112 {offsets = [0, 0], sizes = [2, 32], strides = [1, 1]} : vector<2x128xf32> to vector<2x32xf32>
    %114 = arith.negf %113 : vector<2x32xf32>
    %115 = math.exp %114 : vector<2x32xf32>
    %cst_48 = arith.constant 1.000000e+00 : f32
    %116 = vector.broadcast %cst_48 : f32 to vector<2x32xf32>
    %117 = arith.addf %116, %115 : vector<2x32xf32>
    %118 = arith.divf %116, %117 : vector<2x32xf32>
    %119 = vector.extract_strided_slice %112 {offsets = [0, 32], sizes = [2, 32], strides = [1, 1]} : vector<2x128xf32> to vector<2x32xf32>
    %120 = arith.negf %119 : vector<2x32xf32>
    %121 = math.exp %120 : vector<2x32xf32>
    %cst_49 = arith.constant 1.000000e+00 : f32
    %122 = vector.broadcast %cst_49 : f32 to vector<2x32xf32>
    %123 = arith.addf %122, %121 : vector<2x32xf32>
    %124 = arith.divf %122, %123 : vector<2x32xf32>
    %125 = vector.extract_strided_slice %112 {offsets = [0, 64], sizes = [2, 32], strides = [1, 1]} : vector<2x128xf32> to vector<2x32xf32>
    %126 = math.tanh %125 : vector<2x32xf32>
    %127 = vector.extract_strided_slice %112 {offsets = [0, 96], sizes = [2, 32], strides = [1, 1]} : vector<2x128xf32> to vector<2x32xf32>
    %128 = arith.negf %127 : vector<2x32xf32>
    %129 = math.exp %128 : vector<2x32xf32>
    %cst_50 = arith.constant 1.000000e+00 : f32
    %130 = vector.broadcast %cst_50 : f32 to vector<2x32xf32>
    %131 = arith.addf %130, %129 : vector<2x32xf32>
    %132 = arith.divf %130, %131 : vector<2x32xf32>
    %133 = arith.mulf %124, %96 : vector<2x32xf32>
    %134 = arith.mulf %118, %126 : vector<2x32xf32>
    %135 = arith.addf %133, %134 : vector<2x32xf32>
    %136 = math.tanh %135 : vector<2x32xf32>
    %137 = arith.mulf %132, %136 : vector<2x32xf32>
    %c0_51 = arith.constant 0 : index
    %138 = arith.index_cast %107 : i32 to index
    %c0_52 = arith.constant 0 : index
    %139 = vector.load %arg6[%c0_51, %138, %c0_52] : memref<1x16x32xf32, #tpu.memory_space<vmem>>, vector<1x2x32xf32>
    %140 = vector.shape_cast %139 : vector<1x2x32xf32> to vector<2x32xf32>
    %141 = vector.shape_cast %137 : vector<2x32xf32> to vector<1x2x32xf32>
    tpu.vector_store %arg6[%c0_51, %138, %c0_52], %141 {strides = array<i32>} : memref<1x16x32xf32, #tpu.memory_space<vmem>>, vector<1x2x32xf32>,
    %c3_i32 = arith.constant 3 : i32
    %c2_i32_53 = arith.constant 2 : i32
    %142 = arith.muli %c2_i32_53, %c3_i32 : i32
    %c7_i32_54 = arith.constant 7 : i32
    %143 = arith.subi %c7_i32_54, %142 : i32
    %144 = arith.muli %arg0, %143 : i32
    %145 = arith.addi %c3_i32, %144 : i32
    %c2_i32_55 = arith.constant 2 : i32
    %146 = arith.muli %145, %c2_i32_55 : i32
    %147 = arith.index_cast %146 : i32 to index
    %c0_56 = arith.constant 0 : index
    %148 = vector.load %arg7[%147, %c0_56] : memref<16x128xf32, #tpu.memory_space<vmem>>, vector<2x128xf32>
    %149 = arith.truncf %137 : vector<2x32xf32> to vector<2x32xbf16>
    %cst_57 = arith.constant dense<0.000000e+00> : vector<2x128xf32>
    %150 = tpu.matmul %149, %22, %cst_57 {dimension_numbers = #tpu.dot_dimension_numbers<[1], [0], [0], [1], [0, 0, 1, 1], [], []>} : vector<2x32xbf16>, vector<32x128xbf16>, vector<2x128xf32> -> vector<2x128xf32>
    %151 = arith.addf %148, %150 : vector<2x128xf32>
    %152 = vector.extract_strided_slice %151 {offsets = [0, 0], sizes = [2, 32], strides = [1, 1]} : vector<2x128xf32> to vector<2x32xf32>
    %153 = arith.negf %152 : vector<2x32xf32>
    %154 = math.exp %153 : vector<2x32xf32>
    %cst_58 = arith.constant 1.000000e+00 : f32
    %155 = vector.broadcast %cst_58 : f32 to vector<2x32xf32>
    %156 = arith.addf %155, %154 : vector<2x32xf32>
    %157 = arith.divf %155, %156 : vector<2x32xf32>
    %158 = vector.extract_strided_slice %151 {offsets = [0, 32], sizes = [2, 32], strides = [1, 1]} : vector<2x128xf32> to vector<2x32xf32>
    %159 = arith.negf %158 : vector<2x32xf32>
    %160 = math.exp %159 : vector<2x32xf32>
    %cst_59 = arith.constant 1.000000e+00 : f32
    %161 = vector.broadcast %cst_59 : f32 to vector<2x32xf32>
    %162 = arith.addf %161, %160 : vector<2x32xf32>
    %163 = arith.divf %161, %162 : vector<2x32xf32>
    %164 = vector.extract_strided_slice %151 {offsets = [0, 64], sizes = [2, 32], strides = [1, 1]} : vector<2x128xf32> to vector<2x32xf32>
    %165 = math.tanh %164 : vector<2x32xf32>
    %166 = vector.extract_strided_slice %151 {offsets = [0, 96], sizes = [2, 32], strides = [1, 1]} : vector<2x128xf32> to vector<2x32xf32>
    %167 = arith.negf %166 : vector<2x32xf32>
    %168 = math.exp %167 : vector<2x32xf32>
    %cst_60 = arith.constant 1.000000e+00 : f32
    %169 = vector.broadcast %cst_60 : f32 to vector<2x32xf32>
    %170 = arith.addf %169, %168 : vector<2x32xf32>
    %171 = arith.divf %169, %170 : vector<2x32xf32>
    %172 = arith.mulf %163, %135 : vector<2x32xf32>
    %173 = arith.mulf %157, %165 : vector<2x32xf32>
    %174 = arith.addf %172, %173 : vector<2x32xf32>
    %175 = math.tanh %174 : vector<2x32xf32>
    %176 = arith.mulf %171, %175 : vector<2x32xf32>
    %c0_61 = arith.constant 0 : index
    %177 = arith.index_cast %146 : i32 to index
    %c0_62 = arith.constant 0 : index
    %178 = vector.load %arg6[%c0_61, %177, %c0_62] : memref<1x16x32xf32, #tpu.memory_space<vmem>>, vector<1x2x32xf32>
    %179 = vector.shape_cast %178 : vector<1x2x32xf32> to vector<2x32xf32>
    %180 = vector.shape_cast %176 : vector<2x32xf32> to vector<1x2x32xf32>
    tpu.vector_store %arg6[%c0_61, %177, %c0_62], %180 {strides = array<i32>} : memref<1x16x32xf32, #tpu.memory_space<vmem>>, vector<1x2x32xf32>,
    %c4_i32 = arith.constant 4 : i32
    %c2_i32_63 = arith.constant 2 : i32
    %181 = arith.muli %c2_i32_63, %c4_i32 : i32
    %c7_i32_64 = arith.constant 7 : i32
    %182 = arith.subi %c7_i32_64, %181 : i32
    %183 = arith.muli %arg0, %182 : i32
    %184 = arith.addi %c4_i32, %183 : i32
    %c2_i32_65 = arith.constant 2 : i32
    %185 = arith.muli %184, %c2_i32_65 : i32
    %186 = arith.index_cast %185 : i32 to index
    %c0_66 = arith.constant 0 : index
    %187 = vector.load %arg7[%186, %c0_66] : memref<16x128xf32, #tpu.memory_space<vmem>>, vector<2x128xf32>
    %188 = arith.truncf %176 : vector<2x32xf32> to vector<2x32xbf16>
    %cst_67 = arith.constant dense<0.000000e+00> : vector<2x128xf32>
    %189 = tpu.matmul %188, %22, %cst_67 {dimension_numbers = #tpu.dot_dimension_numbers<[1], [0], [0], [1], [0, 0, 1, 1], [], []>} : vector<2x32xbf16>, vector<32x128xbf16>, vector<2x128xf32> -> vector<2x128xf32>
    %190 = arith.addf %187, %189 : vector<2x128xf32>
    %191 = vector.extract_strided_slice %190 {offsets = [0, 0], sizes = [2, 32], strides = [1, 1]} : vector<2x128xf32> to vector<2x32xf32>
    %192 = arith.negf %191 : vector<2x32xf32>
    %193 = math.exp %192 : vector<2x32xf32>
    %cst_68 = arith.constant 1.000000e+00 : f32
    %194 = vector.broadcast %cst_68 : f32 to vector<2x32xf32>
    %195 = arith.addf %194, %193 : vector<2x32xf32>
    %196 = arith.divf %194, %195 : vector<2x32xf32>
    %197 = vector.extract_strided_slice %190 {offsets = [0, 32], sizes = [2, 32], strides = [1, 1]} : vector<2x128xf32> to vector<2x32xf32>
    %198 = arith.negf %197 : vector<2x32xf32>
    %199 = math.exp %198 : vector<2x32xf32>
    %cst_69 = arith.constant 1.000000e+00 : f32
    %200 = vector.broadcast %cst_69 : f32 to vector<2x32xf32>
    %201 = arith.addf %200, %199 : vector<2x32xf32>
    %202 = arith.divf %200, %201 : vector<2x32xf32>
    %203 = vector.extract_strided_slice %190 {offsets = [0, 64], sizes = [2, 32], strides = [1, 1]} : vector<2x128xf32> to vector<2x32xf32>
    %204 = math.tanh %203 : vector<2x32xf32>
    %205 = vector.extract_strided_slice %190 {offsets = [0, 96], sizes = [2, 32], strides = [1, 1]} : vector<2x128xf32> to vector<2x32xf32>
    %206 = arith.negf %205 : vector<2x32xf32>
    %207 = math.exp %206 : vector<2x32xf32>
    %cst_70 = arith.constant 1.000000e+00 : f32
    %208 = vector.broadcast %cst_70 : f32 to vector<2x32xf32>
    %209 = arith.addf %208, %207 : vector<2x32xf32>
    %210 = arith.divf %208, %209 : vector<2x32xf32>
    %211 = arith.mulf %202, %174 : vector<2x32xf32>
    %212 = arith.mulf %196, %204 : vector<2x32xf32>
    %213 = arith.addf %211, %212 : vector<2x32xf32>
    %214 = math.tanh %213 : vector<2x32xf32>
    %215 = arith.mulf %210, %214 : vector<2x32xf32>
    %c0_71 = arith.constant 0 : index
    %216 = arith.index_cast %185 : i32 to index
    %c0_72 = arith.constant 0 : index
    %217 = vector.load %arg6[%c0_71, %216, %c0_72] : memref<1x16x32xf32, #tpu.memory_space<vmem>>, vector<1x2x32xf32>
    %218 = vector.shape_cast %217 : vector<1x2x32xf32> to vector<2x32xf32>
    %219 = vector.shape_cast %215 : vector<2x32xf32> to vector<1x2x32xf32>
    tpu.vector_store %arg6[%c0_71, %216, %c0_72], %219 {strides = array<i32>} : memref<1x16x32xf32, #tpu.memory_space<vmem>>, vector<1x2x32xf32>,
    %c5_i32 = arith.constant 5 : i32
    %c2_i32_73 = arith.constant 2 : i32
    %220 = arith.muli %c2_i32_73, %c5_i32 : i32
    %c7_i32_74 = arith.constant 7 : i32
    %221 = arith.subi %c7_i32_74, %220 : i32
    %222 = arith.muli %arg0, %221 : i32
    %223 = arith.addi %c5_i32, %222 : i32
    %c2_i32_75 = arith.constant 2 : i32
    %224 = arith.muli %223, %c2_i32_75 : i32
    %225 = arith.index_cast %224 : i32 to index
    %c0_76 = arith.constant 0 : index
    %226 = vector.load %arg7[%225, %c0_76] : memref<16x128xf32, #tpu.memory_space<vmem>>, vector<2x128xf32>
    %227 = arith.truncf %215 : vector<2x32xf32> to vector<2x32xbf16>
    %cst_77 = arith.constant dense<0.000000e+00> : vector<2x128xf32>
    %228 = tpu.matmul %227, %22, %cst_77 {dimension_numbers = #tpu.dot_dimension_numbers<[1], [0], [0], [1], [0, 0, 1, 1], [], []>} : vector<2x32xbf16>, vector<32x128xbf16>, vector<2x128xf32> -> vector<2x128xf32>
    %229 = arith.addf %226, %228 : vector<2x128xf32>
    %230 = vector.extract_strided_slice %229 {offsets = [0, 0], sizes = [2, 32], strides = [1, 1]} : vector<2x128xf32> to vector<2x32xf32>
    %231 = arith.negf %230 : vector<2x32xf32>
    %232 = math.exp %231 : vector<2x32xf32>
    %cst_78 = arith.constant 1.000000e+00 : f32
    %233 = vector.broadcast %cst_78 : f32 to vector<2x32xf32>
    %234 = arith.addf %233, %232 : vector<2x32xf32>
    %235 = arith.divf %233, %234 : vector<2x32xf32>
    %236 = vector.extract_strided_slice %229 {offsets = [0, 32], sizes = [2, 32], strides = [1, 1]} : vector<2x128xf32> to vector<2x32xf32>
    %237 = arith.negf %236 : vector<2x32xf32>
    %238 = math.exp %237 : vector<2x32xf32>
    %cst_79 = arith.constant 1.000000e+00 : f32
    %239 = vector.broadcast %cst_79 : f32 to vector<2x32xf32>
    %240 = arith.addf %239, %238 : vector<2x32xf32>
    %241 = arith.divf %239, %240 : vector<2x32xf32>
    %242 = vector.extract_strided_slice %229 {offsets = [0, 64], sizes = [2, 32], strides = [1, 1]} : vector<2x128xf32> to vector<2x32xf32>
    %243 = math.tanh %242 : vector<2x32xf32>
    %244 = vector.extract_strided_slice %229 {offsets = [0, 96], sizes = [2, 32], strides = [1, 1]} : vector<2x128xf32> to vector<2x32xf32>
    %245 = arith.negf %244 : vector<2x32xf32>
    %246 = math.exp %245 : vector<2x32xf32>
    %cst_80 = arith.constant 1.000000e+00 : f32
    %247 = vector.broadcast %cst_80 : f32 to vector<2x32xf32>
    %248 = arith.addf %247, %246 : vector<2x32xf32>
    %249 = arith.divf %247, %248 : vector<2x32xf32>
    %250 = arith.mulf %241, %213 : vector<2x32xf32>
    %251 = arith.mulf %235, %243 : vector<2x32xf32>
    %252 = arith.addf %250, %251 : vector<2x32xf32>
    %253 = math.tanh %252 : vector<2x32xf32>
    %254 = arith.mulf %249, %253 : vector<2x32xf32>
    %c0_81 = arith.constant 0 : index
    %255 = arith.index_cast %224 : i32 to index
    %c0_82 = arith.constant 0 : index
    %256 = vector.load %arg6[%c0_81, %255, %c0_82] : memref<1x16x32xf32, #tpu.memory_space<vmem>>, vector<1x2x32xf32>
    %257 = vector.shape_cast %256 : vector<1x2x32xf32> to vector<2x32xf32>
    %258 = vector.shape_cast %254 : vector<2x32xf32> to vector<1x2x32xf32>
    tpu.vector_store %arg6[%c0_81, %255, %c0_82], %258 {strides = array<i32>} : memref<1x16x32xf32, #tpu.memory_space<vmem>>, vector<1x2x32xf32>,
    %c6_i32 = arith.constant 6 : i32
    %c2_i32_83 = arith.constant 2 : i32
    %259 = arith.muli %c2_i32_83, %c6_i32 : i32
    %c7_i32_84 = arith.constant 7 : i32
    %260 = arith.subi %c7_i32_84, %259 : i32
    %261 = arith.muli %arg0, %260 : i32
    %262 = arith.addi %c6_i32, %261 : i32
    %c2_i32_85 = arith.constant 2 : i32
    %263 = arith.muli %262, %c2_i32_85 : i32
    %264 = arith.index_cast %263 : i32 to index
    %c0_86 = arith.constant 0 : index
    %265 = vector.load %arg7[%264, %c0_86] : memref<16x128xf32, #tpu.memory_space<vmem>>, vector<2x128xf32>
    %266 = arith.truncf %254 : vector<2x32xf32> to vector<2x32xbf16>
    %cst_87 = arith.constant dense<0.000000e+00> : vector<2x128xf32>
    %267 = tpu.matmul %266, %22, %cst_87 {dimension_numbers = #tpu.dot_dimension_numbers<[1], [0], [0], [1], [0, 0, 1, 1], [], []>} : vector<2x32xbf16>, vector<32x128xbf16>, vector<2x128xf32> -> vector<2x128xf32>
    %268 = arith.addf %265, %267 : vector<2x128xf32>
    %269 = vector.extract_strided_slice %268 {offsets = [0, 0], sizes = [2, 32], strides = [1, 1]} : vector<2x128xf32> to vector<2x32xf32>
    %270 = arith.negf %269 : vector<2x32xf32>
    %271 = math.exp %270 : vector<2x32xf32>
    %cst_88 = arith.constant 1.000000e+00 : f32
    %272 = vector.broadcast %cst_88 : f32 to vector<2x32xf32>
    %273 = arith.addf %272, %271 : vector<2x32xf32>
    %274 = arith.divf %272, %273 : vector<2x32xf32>
    %275 = vector.extract_strided_slice %268 {offsets = [0, 32], sizes = [2, 32], strides = [1, 1]} : vector<2x128xf32> to vector<2x32xf32>
    %276 = arith.negf %275 : vector<2x32xf32>
    %277 = math.exp %276 : vector<2x32xf32>
    %cst_89 = arith.constant 1.000000e+00 : f32
    %278 = vector.broadcast %cst_89 : f32 to vector<2x32xf32>
    %279 = arith.addf %278, %277 : vector<2x32xf32>
    %280 = arith.divf %278, %279 : vector<2x32xf32>
    %281 = vector.extract_strided_slice %268 {offsets = [0, 64], sizes = [2, 32], strides = [1, 1]} : vector<2x128xf32> to vector<2x32xf32>
    %282 = math.tanh %281 : vector<2x32xf32>
    %283 = vector.extract_strided_slice %268 {offsets = [0, 96], sizes = [2, 32], strides = [1, 1]} : vector<2x128xf32> to vector<2x32xf32>
    %284 = arith.negf %283 : vector<2x32xf32>
    %285 = math.exp %284 : vector<2x32xf32>
    %cst_90 = arith.constant 1.000000e+00 : f32
    %286 = vector.broadcast %cst_90 : f32 to vector<2x32xf32>
    %287 = arith.addf %286, %285 : vector<2x32xf32>
    %288 = arith.divf %286, %287 : vector<2x32xf32>
    %289 = arith.mulf %280, %252 : vector<2x32xf32>
    %290 = arith.mulf %274, %282 : vector<2x32xf32>
    %291 = arith.addf %289, %290 : vector<2x32xf32>
    %292 = math.tanh %291 : vector<2x32xf32>
    %293 = arith.mulf %288, %292 : vector<2x32xf32>
    %c0_91 = arith.constant 0 : index
    %294 = arith.index_cast %263 : i32 to index
    %c0_92 = arith.constant 0 : index
    %295 = vector.load %arg6[%c0_91, %294, %c0_92] : memref<1x16x32xf32, #tpu.memory_space<vmem>>, vector<1x2x32xf32>
    %296 = vector.shape_cast %295 : vector<1x2x32xf32> to vector<2x32xf32>
    %297 = vector.shape_cast %293 : vector<2x32xf32> to vector<1x2x32xf32>
    tpu.vector_store %arg6[%c0_91, %294, %c0_92], %297 {strides = array<i32>} : memref<1x16x32xf32, #tpu.memory_space<vmem>>, vector<1x2x32xf32>,
    %c7_i32_93 = arith.constant 7 : i32
    %c2_i32_94 = arith.constant 2 : i32
    %298 = arith.muli %c2_i32_94, %c7_i32_93 : i32
    %c7_i32_95 = arith.constant 7 : i32
    %299 = arith.subi %c7_i32_95, %298 : i32
    %300 = arith.muli %arg0, %299 : i32
    %301 = arith.addi %c7_i32_93, %300 : i32
    %c2_i32_96 = arith.constant 2 : i32
    %302 = arith.muli %301, %c2_i32_96 : i32
    %303 = arith.index_cast %302 : i32 to index
    %c0_97 = arith.constant 0 : index
    %304 = vector.load %arg7[%303, %c0_97] : memref<16x128xf32, #tpu.memory_space<vmem>>, vector<2x128xf32>
    %305 = arith.truncf %293 : vector<2x32xf32> to vector<2x32xbf16>
    %cst_98 = arith.constant dense<0.000000e+00> : vector<2x128xf32>
    %306 = tpu.matmul %305, %22, %cst_98 {dimension_numbers = #tpu.dot_dimension_numbers<[1], [0], [0], [1], [0, 0, 1, 1], [], []>} : vector<2x32xbf16>, vector<32x128xbf16>, vector<2x128xf32> -> vector<2x128xf32>
    %307 = arith.addf %304, %306 : vector<2x128xf32>
    %308 = vector.extract_strided_slice %307 {offsets = [0, 0], sizes = [2, 32], strides = [1, 1]} : vector<2x128xf32> to vector<2x32xf32>
    %309 = arith.negf %308 : vector<2x32xf32>
    %310 = math.exp %309 : vector<2x32xf32>
    %cst_99 = arith.constant 1.000000e+00 : f32
    %311 = vector.broadcast %cst_99 : f32 to vector<2x32xf32>
    %312 = arith.addf %311, %310 : vector<2x32xf32>
    %313 = arith.divf %311, %312 : vector<2x32xf32>
    %314 = vector.extract_strided_slice %307 {offsets = [0, 32], sizes = [2, 32], strides = [1, 1]} : vector<2x128xf32> to vector<2x32xf32>
    %315 = arith.negf %314 : vector<2x32xf32>
    %316 = math.exp %315 : vector<2x32xf32>
    %cst_100 = arith.constant 1.000000e+00 : f32
    %317 = vector.broadcast %cst_100 : f32 to vector<2x32xf32>
    %318 = arith.addf %317, %316 : vector<2x32xf32>
    %319 = arith.divf %317, %318 : vector<2x32xf32>
    %320 = vector.extract_strided_slice %307 {offsets = [0, 64], sizes = [2, 32], strides = [1, 1]} : vector<2x128xf32> to vector<2x32xf32>
    %321 = math.tanh %320 : vector<2x32xf32>
    %322 = vector.extract_strided_slice %307 {offsets = [0, 96], sizes = [2, 32], strides = [1, 1]} : vector<2x128xf32> to vector<2x32xf32>
    %323 = arith.negf %322 : vector<2x32xf32>
    %324 = math.exp %323 : vector<2x32xf32>
    %cst_101 = arith.constant 1.000000e+00 : f32
    %325 = vector.broadcast %cst_101 : f32 to vector<2x32xf32>
    %326 = arith.addf %325, %324 : vector<2x32xf32>
    %327 = arith.divf %325, %326 : vector<2x32xf32>
    %328 = arith.mulf %319, %291 : vector<2x32xf32>
    %329 = arith.mulf %313, %321 : vector<2x32xf32>
    %330 = arith.addf %328, %329 : vector<2x32xf32>
    %331 = math.tanh %330 : vector<2x32xf32>
    %332 = arith.mulf %327, %331 : vector<2x32xf32>
    %c0_102 = arith.constant 0 : index
    %333 = arith.index_cast %302 : i32 to index
    %c0_103 = arith.constant 0 : index
    %334 = vector.load %arg6[%c0_102, %333, %c0_103] : memref<1x16x32xf32, #tpu.memory_space<vmem>>, vector<1x2x32xf32>
    %335 = vector.shape_cast %334 : vector<1x2x32xf32> to vector<2x32xf32>
    %336 = vector.shape_cast %332 : vector<2x32xf32> to vector<1x2x32xf32>
    tpu.vector_store %arg6[%c0_102, %333, %c0_103], %336 {strides = array<i32>} : memref<1x16x32xf32, #tpu.memory_space<vmem>>, vector<1x2x32xf32>,
    %c8_i32 = arith.constant 8 : i32
    %c0_104 = arith.constant 0 : index
    %c0_105 = arith.constant 0 : index
    %337 = vector.load %arg8[%c0_104, %c0_105] : memref<2x32xf32, #tpu.memory_space<vmem>>, vector<2x32xf32>
    tpu.vector_store %arg8[%c0_104, %c0_105], %332 {strides = array<i32>} : memref<2x32xf32, #tpu.memory_space<vmem>>, vector<2x32xf32>,
    %c0_106 = arith.constant 0 : index
    %c0_107 = arith.constant 0 : index
    %338 = vector.load %arg9[%c0_106, %c0_107] : memref<2x32xf32, #tpu.memory_space<vmem>>, vector<2x32xf32>
    tpu.vector_store %arg9[%c0_106, %c0_107], %330 {strides = array<i32>} : memref<2x32xf32, #tpu.memory_space<vmem>>, vector<2x32xf32>,
    return
  }
  func.func @transform_0(%arg0: i32, %arg1: i32) -> (i32, i32, i32) {
    %c2_i32 = arith.constant 2 : i32
    %0 = arith.muli %c2_i32, %arg1 : i32
    %c0_i32 = arith.constant 0 : i32
    %1 = arith.subi %c0_i32, %0 : i32
    %2 = arith.muli %arg0, %1 : i32
    %3 = arith.addi %arg1, %2 : i32
    %c0_i32_0 = arith.constant 0 : i32
    %c0_i32_1 = arith.constant 0 : i32
    %c0_i32_2 = arith.constant 0 : i32
    return %c0_i32_0, %3, %c0_i32_1 : i32, i32, i32
  }
  func.func @transform_1(%arg0: i32, %arg1: i32) -> (i32, i32, i32) {
    %c0_i32 = arith.constant 0 : i32
    %c0_i32_0 = arith.constant 0 : i32
    %c0_i32_1 = arith.constant 0 : i32
    return %arg0, %c0_i32, %c0_i32_0 : i32, i32, i32
  }
  func.func @transform_2(%arg0: i32, %arg1: i32) -> (i32, i32, i32) {
    %c0_i32 = arith.constant 0 : i32
    %c0_i32_0 = arith.constant 0 : i32
    %c0_i32_1 = arith.constant 0 : i32
    return %arg0, %c0_i32, %c0_i32_0 : i32, i32, i32
  }
  func.func @transform_3(%arg0: i32, %arg1: i32) -> (i32, i32, i32) {
    %c0_i32 = arith.constant 0 : i32
    %c0_i32_0 = arith.constant 0 : i32
    %c0_i32_1 = arith.constant 0 : i32
    return %arg0, %c0_i32, %c0_i32_0 : i32, i32, i32
  }
  func.func @transform_4(%arg0: i32, %arg1: i32) -> (i32, i32, i32) {
    %c2_i32 = arith.constant 2 : i32
    %0 = arith.muli %c2_i32, %arg1 : i32
    %c0_i32 = arith.constant 0 : i32
    %1 = arith.subi %c0_i32, %0 : i32
    %2 = arith.muli %arg0, %1 : i32
    %3 = arith.addi %arg1, %2 : i32
    %c0_i32_0 = arith.constant 0 : i32
    %c0_i32_1 = arith.constant 0 : i32
    return %arg0, %3, %c0_i32_0 : i32, i32, i32
  }
}

module attributes {stable_mosaic.version = 11 : i64} {
  func.func @_bilstm_layer_kernel(%arg0: i32, %arg1: i32, %arg2: memref<1x16x16xf32, #tpu.memory_space<vmem>>, %arg3: memref<1x16x128xbf16, #tpu.memory_space<vmem>>, %arg4: memref<1x32x128xbf16, #tpu.memory_space<vmem>>, %arg5: memref<1x1x128xf32, #tpu.memory_space<vmem>>, %arg6: memref<1x16x32xf32, #tpu.memory_space<vmem>>, %arg7: memref<16x128xf32, #tpu.memory_space<vmem>>, %arg8: memref<2x32xf32, #tpu.memory_space<vmem>>, %arg9: memref<2x32xf32, #tpu.memory_space<vmem>>) attributes {dimension_semantics = [#tpu.dimension_semantics<parallel>, #tpu.dimension_semantics<arbitrary>], iteration_bounds = array<i64: 2, 1>, scalar_prefetch = 0 : i64, scratch_operands = 3 : i64, tpu.core_type = #tpu.core_type<tc>, window_params = [{transform_indices = @transform_0, window_bounds = array<i64: 1, 16, 16>}, {transform_indices = @transform_1, window_bounds = array<i64: 1, 16, 128>}, {transform_indices = @transform_2, window_bounds = array<i64: 1, 32, 128>}, {transform_indices = @transform_3, window_bounds = array<i64: 1, 1, 128>}, {transform_indices = @transform_4, window_bounds = array<i64: 1, 16, 32>}]} {
    %c0_i32 = arith.constant 0 : i32
    %0 = arith.cmpi eq, %arg1, %c0_i32 : i32
    %1 = arith.extui %0 : i1 to i32
    %c0_i32_0 = arith.constant 0 : i32
    %2 = arith.cmpi ne, %1, %c0_i32_0 : i32
    scf.if %2 {
      %cst_103 = arith.constant 0.000000e+00 : f32
      %332 = vector.broadcast %cst_103 : f32 to vector<2x32xf32>
      %c0_104 = arith.constant 0 : index
      %c0_105 = arith.constant 0 : index
      %333 = vector.load %arg8[%c0_104, %c0_105] : memref<2x32xf32, #tpu.memory_space<vmem>>, vector<2x32xf32>
      tpu.vector_store %arg8[%c0_104, %c0_105], %332 {strides = array<i32>} : memref<2x32xf32, #tpu.memory_space<vmem>>, vector<2x32xf32>,
      %cst_106 = arith.constant 0.000000e+00 : f32
      %334 = vector.broadcast %cst_106 : f32 to vector<2x32xf32>
      %c0_107 = arith.constant 0 : index
      %c0_108 = arith.constant 0 : index
      %335 = vector.load %arg9[%c0_107, %c0_108] : memref<2x32xf32, #tpu.memory_space<vmem>>, vector<2x32xf32>
      tpu.vector_store %arg9[%c0_107, %c0_108], %334 {strides = array<i32>} : memref<2x32xf32, #tpu.memory_space<vmem>>, vector<2x32xf32>,
    } else {
    }
    %c0 = arith.constant 0 : index
    %c0_1 = arith.constant 0 : index
    %c0_2 = arith.constant 0 : index
    %3 = vector.load %arg2[%c0, %c0_1, %c0_2] : memref<1x16x16xf32, #tpu.memory_space<vmem>>, vector<1x16x16xf32>
    %4 = vector.shape_cast %3 : vector<1x16x16xf32> to vector<16x16xf32>
    %5 = arith.truncf %4 : vector<16x16xf32> to vector<16x16xbf16>
    %c0_3 = arith.constant 0 : index
    %c0_4 = arith.constant 0 : index
    %c0_5 = arith.constant 0 : index
    %6 = vector.load %arg3[%c0_3, %c0_4, %c0_5] : memref<1x16x128xbf16, #tpu.memory_space<vmem>>, vector<1x16x128xbf16>
    %7 = vector.shape_cast %6 : vector<1x16x128xbf16> to vector<16x128xbf16>
    %cst = arith.constant dense<0.000000e+00> : vector<16x128xf32>
    %8 = tpu.matmul %5, %7, %cst {dimension_numbers = #tpu.dot_dimension_numbers<[1], [0], [0], [1], [0, 0, 1, 1], [], []>} : vector<16x16xbf16>, vector<16x128xbf16>, vector<16x128xf32> -> vector<16x128xf32>
    %c0_6 = arith.constant 0 : index
    %c0_7 = arith.constant 0 : index
    %c0_8 = arith.constant 0 : index
    %9 = vector.load %arg5[%c0_6, %c0_7, %c0_8] : memref<1x1x128xf32, #tpu.memory_space<vmem>>, vector<1x1x128xf32>
    %10 = vector.shape_cast %9 : vector<1x1x128xf32> to vector<1x128xf32>
    %11 = vector.broadcast %10 : vector<1x128xf32> to vector<16x128xf32>
    %12 = arith.addf %8, %11 : vector<16x128xf32>
    %c0_9 = arith.constant 0 : index
    %c0_10 = arith.constant 0 : index
    %13 = vector.load %arg7[%c0_9, %c0_10] : memref<16x128xf32, #tpu.memory_space<vmem>>, vector<16x128xf32>
    tpu.vector_store %arg7[%c0_9, %c0_10], %12 {strides = array<i32>} : memref<16x128xf32, #tpu.memory_space<vmem>>, vector<16x128xf32>,
    %c0_11 = arith.constant 0 : index
    %c0_12 = arith.constant 0 : index
    %c0_13 = arith.constant 0 : index
    %14 = vector.load %arg4[%c0_11, %c0_12, %c0_13] : memref<1x32x128xbf16, #tpu.memory_space<vmem>>, vector<1x32x128xbf16>
    %15 = vector.shape_cast %14 : vector<1x32x128xbf16> to vector<32x128xbf16>
    %c0_14 = arith.constant 0 : index
    %c0_15 = arith.constant 0 : index
    %16 = vector.load %arg8[%c0_14, %c0_15] : memref<2x32xf32, #tpu.memory_space<vmem>>, vector<2x32xf32>
    %c0_16 = arith.constant 0 : index
    %c0_17 = arith.constant 0 : index
    %17 = vector.load %arg9[%c0_16, %c0_17] : memref<2x32xf32, #tpu.memory_space<vmem>>, vector<2x32xf32>
    %c0_i32_18 = arith.constant 0 : i32
    %c2_i32 = arith.constant 2 : i32
    %18 = arith.muli %c2_i32, %c0_i32_18 : i32
    %c7_i32 = arith.constant 7 : i32
    %19 = arith.subi %c7_i32, %18 : i32
    %20 = arith.muli %arg0, %19 : i32
    %21 = arith.addi %c0_i32_18, %20 : i32
    %c2_i32_19 = arith.constant 2 : i32
    %22 = arith.muli %21, %c2_i32_19 : i32
    %23 = arith.index_cast %22 : i32 to index
    %c0_20 = arith.constant 0 : index
    %24 = vector.load %arg7[%23, %c0_20] : memref<16x128xf32, #tpu.memory_space<vmem>>, vector<2x128xf32>
    %25 = arith.truncf %16 : vector<2x32xf32> to vector<2x32xbf16>
    %cst_21 = arith.constant dense<0.000000e+00> : vector<2x128xf32>
    %26 = tpu.matmul %25, %15, %cst_21 {dimension_numbers = #tpu.dot_dimension_numbers<[1], [0], [0], [1], [0, 0, 1, 1], [], []>} : vector<2x32xbf16>, vector<32x128xbf16>, vector<2x128xf32> -> vector<2x128xf32>
    %27 = arith.addf %24, %26 : vector<2x128xf32>
    %28 = vector.extract_strided_slice %27 {offsets = [0, 0], sizes = [2, 32], strides = [1, 1]} : vector<2x128xf32> to vector<2x32xf32>
    %29 = arith.negf %28 : vector<2x32xf32>
    %30 = math.exp %29 : vector<2x32xf32>
    %cst_22 = arith.constant 1.000000e+00 : f32
    %31 = vector.broadcast %cst_22 : f32 to vector<2x32xf32>
    %32 = arith.addf %31, %30 : vector<2x32xf32>
    %33 = arith.divf %31, %32 : vector<2x32xf32>
    %34 = vector.extract_strided_slice %27 {offsets = [0, 32], sizes = [2, 32], strides = [1, 1]} : vector<2x128xf32> to vector<2x32xf32>
    %35 = arith.negf %34 : vector<2x32xf32>
    %36 = math.exp %35 : vector<2x32xf32>
    %cst_23 = arith.constant 1.000000e+00 : f32
    %37 = vector.broadcast %cst_23 : f32 to vector<2x32xf32>
    %38 = arith.addf %37, %36 : vector<2x32xf32>
    %39 = arith.divf %37, %38 : vector<2x32xf32>
    %40 = vector.extract_strided_slice %27 {offsets = [0, 64], sizes = [2, 32], strides = [1, 1]} : vector<2x128xf32> to vector<2x32xf32>
    %41 = math.tanh %40 : vector<2x32xf32>
    %42 = vector.extract_strided_slice %27 {offsets = [0, 96], sizes = [2, 32], strides = [1, 1]} : vector<2x128xf32> to vector<2x32xf32>
    %43 = arith.negf %42 : vector<2x32xf32>
    %44 = math.exp %43 : vector<2x32xf32>
    %cst_24 = arith.constant 1.000000e+00 : f32
    %45 = vector.broadcast %cst_24 : f32 to vector<2x32xf32>
    %46 = arith.addf %45, %44 : vector<2x32xf32>
    %47 = arith.divf %45, %46 : vector<2x32xf32>
    %48 = arith.mulf %39, %17 : vector<2x32xf32>
    %49 = arith.mulf %33, %41 : vector<2x32xf32>
    %50 = arith.addf %48, %49 : vector<2x32xf32>
    %51 = math.tanh %50 : vector<2x32xf32>
    %52 = arith.mulf %47, %51 : vector<2x32xf32>
    %c0_25 = arith.constant 0 : index
    %53 = arith.index_cast %22 : i32 to index
    %c0_26 = arith.constant 0 : index
    %54 = vector.load %arg6[%c0_25, %53, %c0_26] : memref<1x16x32xf32, #tpu.memory_space<vmem>>, vector<1x2x32xf32>
    %55 = vector.shape_cast %54 : vector<1x2x32xf32> to vector<2x32xf32>
    %56 = vector.shape_cast %52 : vector<2x32xf32> to vector<1x2x32xf32>
    tpu.vector_store %arg6[%c0_25, %53, %c0_26], %56 {strides = array<i32>} : memref<1x16x32xf32, #tpu.memory_space<vmem>>, vector<1x2x32xf32>,
    %c1_i32 = arith.constant 1 : i32
    %c2_i32_27 = arith.constant 2 : i32
    %57 = arith.muli %c2_i32_27, %c1_i32 : i32
    %c7_i32_28 = arith.constant 7 : i32
    %58 = arith.subi %c7_i32_28, %57 : i32
    %59 = arith.muli %arg0, %58 : i32
    %60 = arith.addi %c1_i32, %59 : i32
    %c2_i32_29 = arith.constant 2 : i32
    %61 = arith.muli %60, %c2_i32_29 : i32
    %62 = arith.index_cast %61 : i32 to index
    %c0_30 = arith.constant 0 : index
    %63 = vector.load %arg7[%62, %c0_30] : memref<16x128xf32, #tpu.memory_space<vmem>>, vector<2x128xf32>
    %64 = arith.truncf %52 : vector<2x32xf32> to vector<2x32xbf16>
    %cst_31 = arith.constant dense<0.000000e+00> : vector<2x128xf32>
    %65 = tpu.matmul %64, %15, %cst_31 {dimension_numbers = #tpu.dot_dimension_numbers<[1], [0], [0], [1], [0, 0, 1, 1], [], []>} : vector<2x32xbf16>, vector<32x128xbf16>, vector<2x128xf32> -> vector<2x128xf32>
    %66 = arith.addf %63, %65 : vector<2x128xf32>
    %67 = vector.extract_strided_slice %66 {offsets = [0, 0], sizes = [2, 32], strides = [1, 1]} : vector<2x128xf32> to vector<2x32xf32>
    %68 = arith.negf %67 : vector<2x32xf32>
    %69 = math.exp %68 : vector<2x32xf32>
    %cst_32 = arith.constant 1.000000e+00 : f32
    %70 = vector.broadcast %cst_32 : f32 to vector<2x32xf32>
    %71 = arith.addf %70, %69 : vector<2x32xf32>
    %72 = arith.divf %70, %71 : vector<2x32xf32>
    %73 = vector.extract_strided_slice %66 {offsets = [0, 32], sizes = [2, 32], strides = [1, 1]} : vector<2x128xf32> to vector<2x32xf32>
    %74 = arith.negf %73 : vector<2x32xf32>
    %75 = math.exp %74 : vector<2x32xf32>
    %cst_33 = arith.constant 1.000000e+00 : f32
    %76 = vector.broadcast %cst_33 : f32 to vector<2x32xf32>
    %77 = arith.addf %76, %75 : vector<2x32xf32>
    %78 = arith.divf %76, %77 : vector<2x32xf32>
    %79 = vector.extract_strided_slice %66 {offsets = [0, 64], sizes = [2, 32], strides = [1, 1]} : vector<2x128xf32> to vector<2x32xf32>
    %80 = math.tanh %79 : vector<2x32xf32>
    %81 = vector.extract_strided_slice %66 {offsets = [0, 96], sizes = [2, 32], strides = [1, 1]} : vector<2x128xf32> to vector<2x32xf32>
    %82 = arith.negf %81 : vector<2x32xf32>
    %83 = math.exp %82 : vector<2x32xf32>
    %cst_34 = arith.constant 1.000000e+00 : f32
    %84 = vector.broadcast %cst_34 : f32 to vector<2x32xf32>
    %85 = arith.addf %84, %83 : vector<2x32xf32>
    %86 = arith.divf %84, %85 : vector<2x32xf32>
    %87 = arith.mulf %78, %50 : vector<2x32xf32>
    %88 = arith.mulf %72, %80 : vector<2x32xf32>
    %89 = arith.addf %87, %88 : vector<2x32xf32>
    %90 = math.tanh %89 : vector<2x32xf32>
    %91 = arith.mulf %86, %90 : vector<2x32xf32>
    %c0_35 = arith.constant 0 : index
    %92 = arith.index_cast %61 : i32 to index
    %c0_36 = arith.constant 0 : index
    %93 = vector.load %arg6[%c0_35, %92, %c0_36] : memref<1x16x32xf32, #tpu.memory_space<vmem>>, vector<1x2x32xf32>
    %94 = vector.shape_cast %93 : vector<1x2x32xf32> to vector<2x32xf32>
    %95 = vector.shape_cast %91 : vector<2x32xf32> to vector<1x2x32xf32>
    tpu.vector_store %arg6[%c0_35, %92, %c0_36], %95 {strides = array<i32>} : memref<1x16x32xf32, #tpu.memory_space<vmem>>, vector<1x2x32xf32>,
    %c2_i32_37 = arith.constant 2 : i32
    %c2_i32_38 = arith.constant 2 : i32
    %96 = arith.muli %c2_i32_38, %c2_i32_37 : i32
    %c7_i32_39 = arith.constant 7 : i32
    %97 = arith.subi %c7_i32_39, %96 : i32
    %98 = arith.muli %arg0, %97 : i32
    %99 = arith.addi %c2_i32_37, %98 : i32
    %c2_i32_40 = arith.constant 2 : i32
    %100 = arith.muli %99, %c2_i32_40 : i32
    %101 = arith.index_cast %100 : i32 to index
    %c0_41 = arith.constant 0 : index
    %102 = vector.load %arg7[%101, %c0_41] : memref<16x128xf32, #tpu.memory_space<vmem>>, vector<2x128xf32>
    %103 = arith.truncf %91 : vector<2x32xf32> to vector<2x32xbf16>
    %cst_42 = arith.constant dense<0.000000e+00> : vector<2x128xf32>
    %104 = tpu.matmul %103, %15, %cst_42 {dimension_numbers = #tpu.dot_dimension_numbers<[1], [0], [0], [1], [0, 0, 1, 1], [], []>} : vector<2x32xbf16>, vector<32x128xbf16>, vector<2x128xf32> -> vector<2x128xf32>
    %105 = arith.addf %102, %104 : vector<2x128xf32>
    %106 = vector.extract_strided_slice %105 {offsets = [0, 0], sizes = [2, 32], strides = [1, 1]} : vector<2x128xf32> to vector<2x32xf32>
    %107 = arith.negf %106 : vector<2x32xf32>
    %108 = math.exp %107 : vector<2x32xf32>
    %cst_43 = arith.constant 1.000000e+00 : f32
    %109 = vector.broadcast %cst_43 : f32 to vector<2x32xf32>
    %110 = arith.addf %109, %108 : vector<2x32xf32>
    %111 = arith.divf %109, %110 : vector<2x32xf32>
    %112 = vector.extract_strided_slice %105 {offsets = [0, 32], sizes = [2, 32], strides = [1, 1]} : vector<2x128xf32> to vector<2x32xf32>
    %113 = arith.negf %112 : vector<2x32xf32>
    %114 = math.exp %113 : vector<2x32xf32>
    %cst_44 = arith.constant 1.000000e+00 : f32
    %115 = vector.broadcast %cst_44 : f32 to vector<2x32xf32>
    %116 = arith.addf %115, %114 : vector<2x32xf32>
    %117 = arith.divf %115, %116 : vector<2x32xf32>
    %118 = vector.extract_strided_slice %105 {offsets = [0, 64], sizes = [2, 32], strides = [1, 1]} : vector<2x128xf32> to vector<2x32xf32>
    %119 = math.tanh %118 : vector<2x32xf32>
    %120 = vector.extract_strided_slice %105 {offsets = [0, 96], sizes = [2, 32], strides = [1, 1]} : vector<2x128xf32> to vector<2x32xf32>
    %121 = arith.negf %120 : vector<2x32xf32>
    %122 = math.exp %121 : vector<2x32xf32>
    %cst_45 = arith.constant 1.000000e+00 : f32
    %123 = vector.broadcast %cst_45 : f32 to vector<2x32xf32>
    %124 = arith.addf %123, %122 : vector<2x32xf32>
    %125 = arith.divf %123, %124 : vector<2x32xf32>
    %126 = arith.mulf %117, %89 : vector<2x32xf32>
    %127 = arith.mulf %111, %119 : vector<2x32xf32>
    %128 = arith.addf %126, %127 : vector<2x32xf32>
    %129 = math.tanh %128 : vector<2x32xf32>
    %130 = arith.mulf %125, %129 : vector<2x32xf32>
    %c0_46 = arith.constant 0 : index
    %131 = arith.index_cast %100 : i32 to index
    %c0_47 = arith.constant 0 : index
    %132 = vector.load %arg6[%c0_46, %131, %c0_47] : memref<1x16x32xf32, #tpu.memory_space<vmem>>, vector<1x2x32xf32>
    %133 = vector.shape_cast %132 : vector<1x2x32xf32> to vector<2x32xf32>
    %134 = vector.shape_cast %130 : vector<2x32xf32> to vector<1x2x32xf32>
    tpu.vector_store %arg6[%c0_46, %131, %c0_47], %134 {strides = array<i32>} : memref<1x16x32xf32, #tpu.memory_space<vmem>>, vector<1x2x32xf32>,
    %c3_i32 = arith.constant 3 : i32
    %c2_i32_48 = arith.constant 2 : i32
    %135 = arith.muli %c2_i32_48, %c3_i32 : i32
    %c7_i32_49 = arith.constant 7 : i32
    %136 = arith.subi %c7_i32_49, %135 : i32
    %137 = arith.muli %arg0, %136 : i32
    %138 = arith.addi %c3_i32, %137 : i32
    %c2_i32_50 = arith.constant 2 : i32
    %139 = arith.muli %138, %c2_i32_50 : i32
    %140 = arith.index_cast %139 : i32 to index
    %c0_51 = arith.constant 0 : index
    %141 = vector.load %arg7[%140, %c0_51] : memref<16x128xf32, #tpu.memory_space<vmem>>, vector<2x128xf32>
    %142 = arith.truncf %130 : vector<2x32xf32> to vector<2x32xbf16>
    %cst_52 = arith.constant dense<0.000000e+00> : vector<2x128xf32>
    %143 = tpu.matmul %142, %15, %cst_52 {dimension_numbers = #tpu.dot_dimension_numbers<[1], [0], [0], [1], [0, 0, 1, 1], [], []>} : vector<2x32xbf16>, vector<32x128xbf16>, vector<2x128xf32> -> vector<2x128xf32>
    %144 = arith.addf %141, %143 : vector<2x128xf32>
    %145 = vector.extract_strided_slice %144 {offsets = [0, 0], sizes = [2, 32], strides = [1, 1]} : vector<2x128xf32> to vector<2x32xf32>
    %146 = arith.negf %145 : vector<2x32xf32>
    %147 = math.exp %146 : vector<2x32xf32>
    %cst_53 = arith.constant 1.000000e+00 : f32
    %148 = vector.broadcast %cst_53 : f32 to vector<2x32xf32>
    %149 = arith.addf %148, %147 : vector<2x32xf32>
    %150 = arith.divf %148, %149 : vector<2x32xf32>
    %151 = vector.extract_strided_slice %144 {offsets = [0, 32], sizes = [2, 32], strides = [1, 1]} : vector<2x128xf32> to vector<2x32xf32>
    %152 = arith.negf %151 : vector<2x32xf32>
    %153 = math.exp %152 : vector<2x32xf32>
    %cst_54 = arith.constant 1.000000e+00 : f32
    %154 = vector.broadcast %cst_54 : f32 to vector<2x32xf32>
    %155 = arith.addf %154, %153 : vector<2x32xf32>
    %156 = arith.divf %154, %155 : vector<2x32xf32>
    %157 = vector.extract_strided_slice %144 {offsets = [0, 64], sizes = [2, 32], strides = [1, 1]} : vector<2x128xf32> to vector<2x32xf32>
    %158 = math.tanh %157 : vector<2x32xf32>
    %159 = vector.extract_strided_slice %144 {offsets = [0, 96], sizes = [2, 32], strides = [1, 1]} : vector<2x128xf32> to vector<2x32xf32>
    %160 = arith.negf %159 : vector<2x32xf32>
    %161 = math.exp %160 : vector<2x32xf32>
    %cst_55 = arith.constant 1.000000e+00 : f32
    %162 = vector.broadcast %cst_55 : f32 to vector<2x32xf32>
    %163 = arith.addf %162, %161 : vector<2x32xf32>
    %164 = arith.divf %162, %163 : vector<2x32xf32>
    %165 = arith.mulf %156, %128 : vector<2x32xf32>
    %166 = arith.mulf %150, %158 : vector<2x32xf32>
    %167 = arith.addf %165, %166 : vector<2x32xf32>
    %168 = math.tanh %167 : vector<2x32xf32>
    %169 = arith.mulf %164, %168 : vector<2x32xf32>
    %c0_56 = arith.constant 0 : index
    %170 = arith.index_cast %139 : i32 to index
    %c0_57 = arith.constant 0 : index
    %171 = vector.load %arg6[%c0_56, %170, %c0_57] : memref<1x16x32xf32, #tpu.memory_space<vmem>>, vector<1x2x32xf32>
    %172 = vector.shape_cast %171 : vector<1x2x32xf32> to vector<2x32xf32>
    %173 = vector.shape_cast %169 : vector<2x32xf32> to vector<1x2x32xf32>
    tpu.vector_store %arg6[%c0_56, %170, %c0_57], %173 {strides = array<i32>} : memref<1x16x32xf32, #tpu.memory_space<vmem>>, vector<1x2x32xf32>,
    %c4_i32 = arith.constant 4 : i32
    %c2_i32_58 = arith.constant 2 : i32
    %174 = arith.muli %c2_i32_58, %c4_i32 : i32
    %c7_i32_59 = arith.constant 7 : i32
    %175 = arith.subi %c7_i32_59, %174 : i32
    %176 = arith.muli %arg0, %175 : i32
    %177 = arith.addi %c4_i32, %176 : i32
    %c2_i32_60 = arith.constant 2 : i32
    %178 = arith.muli %177, %c2_i32_60 : i32
    %179 = arith.index_cast %178 : i32 to index
    %c0_61 = arith.constant 0 : index
    %180 = vector.load %arg7[%179, %c0_61] : memref<16x128xf32, #tpu.memory_space<vmem>>, vector<2x128xf32>
    %181 = arith.truncf %169 : vector<2x32xf32> to vector<2x32xbf16>
    %cst_62 = arith.constant dense<0.000000e+00> : vector<2x128xf32>
    %182 = tpu.matmul %181, %15, %cst_62 {dimension_numbers = #tpu.dot_dimension_numbers<[1], [0], [0], [1], [0, 0, 1, 1], [], []>} : vector<2x32xbf16>, vector<32x128xbf16>, vector<2x128xf32> -> vector<2x128xf32>
    %183 = arith.addf %180, %182 : vector<2x128xf32>
    %184 = vector.extract_strided_slice %183 {offsets = [0, 0], sizes = [2, 32], strides = [1, 1]} : vector<2x128xf32> to vector<2x32xf32>
    %185 = arith.negf %184 : vector<2x32xf32>
    %186 = math.exp %185 : vector<2x32xf32>
    %cst_63 = arith.constant 1.000000e+00 : f32
    %187 = vector.broadcast %cst_63 : f32 to vector<2x32xf32>
    %188 = arith.addf %187, %186 : vector<2x32xf32>
    %189 = arith.divf %187, %188 : vector<2x32xf32>
    %190 = vector.extract_strided_slice %183 {offsets = [0, 32], sizes = [2, 32], strides = [1, 1]} : vector<2x128xf32> to vector<2x32xf32>
    %191 = arith.negf %190 : vector<2x32xf32>
    %192 = math.exp %191 : vector<2x32xf32>
    %cst_64 = arith.constant 1.000000e+00 : f32
    %193 = vector.broadcast %cst_64 : f32 to vector<2x32xf32>
    %194 = arith.addf %193, %192 : vector<2x32xf32>
    %195 = arith.divf %193, %194 : vector<2x32xf32>
    %196 = vector.extract_strided_slice %183 {offsets = [0, 64], sizes = [2, 32], strides = [1, 1]} : vector<2x128xf32> to vector<2x32xf32>
    %197 = math.tanh %196 : vector<2x32xf32>
    %198 = vector.extract_strided_slice %183 {offsets = [0, 96], sizes = [2, 32], strides = [1, 1]} : vector<2x128xf32> to vector<2x32xf32>
    %199 = arith.negf %198 : vector<2x32xf32>
    %200 = math.exp %199 : vector<2x32xf32>
    %cst_65 = arith.constant 1.000000e+00 : f32
    %201 = vector.broadcast %cst_65 : f32 to vector<2x32xf32>
    %202 = arith.addf %201, %200 : vector<2x32xf32>
    %203 = arith.divf %201, %202 : vector<2x32xf32>
    %204 = arith.mulf %195, %167 : vector<2x32xf32>
    %205 = arith.mulf %189, %197 : vector<2x32xf32>
    %206 = arith.addf %204, %205 : vector<2x32xf32>
    %207 = math.tanh %206 : vector<2x32xf32>
    %208 = arith.mulf %203, %207 : vector<2x32xf32>
    %c0_66 = arith.constant 0 : index
    %209 = arith.index_cast %178 : i32 to index
    %c0_67 = arith.constant 0 : index
    %210 = vector.load %arg6[%c0_66, %209, %c0_67] : memref<1x16x32xf32, #tpu.memory_space<vmem>>, vector<1x2x32xf32>
    %211 = vector.shape_cast %210 : vector<1x2x32xf32> to vector<2x32xf32>
    %212 = vector.shape_cast %208 : vector<2x32xf32> to vector<1x2x32xf32>
    tpu.vector_store %arg6[%c0_66, %209, %c0_67], %212 {strides = array<i32>} : memref<1x16x32xf32, #tpu.memory_space<vmem>>, vector<1x2x32xf32>,
    %c5_i32 = arith.constant 5 : i32
    %c2_i32_68 = arith.constant 2 : i32
    %213 = arith.muli %c2_i32_68, %c5_i32 : i32
    %c7_i32_69 = arith.constant 7 : i32
    %214 = arith.subi %c7_i32_69, %213 : i32
    %215 = arith.muli %arg0, %214 : i32
    %216 = arith.addi %c5_i32, %215 : i32
    %c2_i32_70 = arith.constant 2 : i32
    %217 = arith.muli %216, %c2_i32_70 : i32
    %218 = arith.index_cast %217 : i32 to index
    %c0_71 = arith.constant 0 : index
    %219 = vector.load %arg7[%218, %c0_71] : memref<16x128xf32, #tpu.memory_space<vmem>>, vector<2x128xf32>
    %220 = arith.truncf %208 : vector<2x32xf32> to vector<2x32xbf16>
    %cst_72 = arith.constant dense<0.000000e+00> : vector<2x128xf32>
    %221 = tpu.matmul %220, %15, %cst_72 {dimension_numbers = #tpu.dot_dimension_numbers<[1], [0], [0], [1], [0, 0, 1, 1], [], []>} : vector<2x32xbf16>, vector<32x128xbf16>, vector<2x128xf32> -> vector<2x128xf32>
    %222 = arith.addf %219, %221 : vector<2x128xf32>
    %223 = vector.extract_strided_slice %222 {offsets = [0, 0], sizes = [2, 32], strides = [1, 1]} : vector<2x128xf32> to vector<2x32xf32>
    %224 = arith.negf %223 : vector<2x32xf32>
    %225 = math.exp %224 : vector<2x32xf32>
    %cst_73 = arith.constant 1.000000e+00 : f32
    %226 = vector.broadcast %cst_73 : f32 to vector<2x32xf32>
    %227 = arith.addf %226, %225 : vector<2x32xf32>
    %228 = arith.divf %226, %227 : vector<2x32xf32>
    %229 = vector.extract_strided_slice %222 {offsets = [0, 32], sizes = [2, 32], strides = [1, 1]} : vector<2x128xf32> to vector<2x32xf32>
    %230 = arith.negf %229 : vector<2x32xf32>
    %231 = math.exp %230 : vector<2x32xf32>
    %cst_74 = arith.constant 1.000000e+00 : f32
    %232 = vector.broadcast %cst_74 : f32 to vector<2x32xf32>
    %233 = arith.addf %232, %231 : vector<2x32xf32>
    %234 = arith.divf %232, %233 : vector<2x32xf32>
    %235 = vector.extract_strided_slice %222 {offsets = [0, 64], sizes = [2, 32], strides = [1, 1]} : vector<2x128xf32> to vector<2x32xf32>
    %236 = math.tanh %235 : vector<2x32xf32>
    %237 = vector.extract_strided_slice %222 {offsets = [0, 96], sizes = [2, 32], strides = [1, 1]} : vector<2x128xf32> to vector<2x32xf32>
    %238 = arith.negf %237 : vector<2x32xf32>
    %239 = math.exp %238 : vector<2x32xf32>
    %cst_75 = arith.constant 1.000000e+00 : f32
    %240 = vector.broadcast %cst_75 : f32 to vector<2x32xf32>
    %241 = arith.addf %240, %239 : vector<2x32xf32>
    %242 = arith.divf %240, %241 : vector<2x32xf32>
    %243 = arith.mulf %234, %206 : vector<2x32xf32>
    %244 = arith.mulf %228, %236 : vector<2x32xf32>
    %245 = arith.addf %243, %244 : vector<2x32xf32>
    %246 = math.tanh %245 : vector<2x32xf32>
    %247 = arith.mulf %242, %246 : vector<2x32xf32>
    %c0_76 = arith.constant 0 : index
    %248 = arith.index_cast %217 : i32 to index
    %c0_77 = arith.constant 0 : index
    %249 = vector.load %arg6[%c0_76, %248, %c0_77] : memref<1x16x32xf32, #tpu.memory_space<vmem>>, vector<1x2x32xf32>
    %250 = vector.shape_cast %249 : vector<1x2x32xf32> to vector<2x32xf32>
    %251 = vector.shape_cast %247 : vector<2x32xf32> to vector<1x2x32xf32>
    tpu.vector_store %arg6[%c0_76, %248, %c0_77], %251 {strides = array<i32>} : memref<1x16x32xf32, #tpu.memory_space<vmem>>, vector<1x2x32xf32>,
    %c6_i32 = arith.constant 6 : i32
    %c2_i32_78 = arith.constant 2 : i32
    %252 = arith.muli %c2_i32_78, %c6_i32 : i32
    %c7_i32_79 = arith.constant 7 : i32
    %253 = arith.subi %c7_i32_79, %252 : i32
    %254 = arith.muli %arg0, %253 : i32
    %255 = arith.addi %c6_i32, %254 : i32
    %c2_i32_80 = arith.constant 2 : i32
    %256 = arith.muli %255, %c2_i32_80 : i32
    %257 = arith.index_cast %256 : i32 to index
    %c0_81 = arith.constant 0 : index
    %258 = vector.load %arg7[%257, %c0_81] : memref<16x128xf32, #tpu.memory_space<vmem>>, vector<2x128xf32>
    %259 = arith.truncf %247 : vector<2x32xf32> to vector<2x32xbf16>
    %cst_82 = arith.constant dense<0.000000e+00> : vector<2x128xf32>
    %260 = tpu.matmul %259, %15, %cst_82 {dimension_numbers = #tpu.dot_dimension_numbers<[1], [0], [0], [1], [0, 0, 1, 1], [], []>} : vector<2x32xbf16>, vector<32x128xbf16>, vector<2x128xf32> -> vector<2x128xf32>
    %261 = arith.addf %258, %260 : vector<2x128xf32>
    %262 = vector.extract_strided_slice %261 {offsets = [0, 0], sizes = [2, 32], strides = [1, 1]} : vector<2x128xf32> to vector<2x32xf32>
    %263 = arith.negf %262 : vector<2x32xf32>
    %264 = math.exp %263 : vector<2x32xf32>
    %cst_83 = arith.constant 1.000000e+00 : f32
    %265 = vector.broadcast %cst_83 : f32 to vector<2x32xf32>
    %266 = arith.addf %265, %264 : vector<2x32xf32>
    %267 = arith.divf %265, %266 : vector<2x32xf32>
    %268 = vector.extract_strided_slice %261 {offsets = [0, 32], sizes = [2, 32], strides = [1, 1]} : vector<2x128xf32> to vector<2x32xf32>
    %269 = arith.negf %268 : vector<2x32xf32>
    %270 = math.exp %269 : vector<2x32xf32>
    %cst_84 = arith.constant 1.000000e+00 : f32
    %271 = vector.broadcast %cst_84 : f32 to vector<2x32xf32>
    %272 = arith.addf %271, %270 : vector<2x32xf32>
    %273 = arith.divf %271, %272 : vector<2x32xf32>
    %274 = vector.extract_strided_slice %261 {offsets = [0, 64], sizes = [2, 32], strides = [1, 1]} : vector<2x128xf32> to vector<2x32xf32>
    %275 = math.tanh %274 : vector<2x32xf32>
    %276 = vector.extract_strided_slice %261 {offsets = [0, 96], sizes = [2, 32], strides = [1, 1]} : vector<2x128xf32> to vector<2x32xf32>
    %277 = arith.negf %276 : vector<2x32xf32>
    %278 = math.exp %277 : vector<2x32xf32>
    %cst_85 = arith.constant 1.000000e+00 : f32
    %279 = vector.broadcast %cst_85 : f32 to vector<2x32xf32>
    %280 = arith.addf %279, %278 : vector<2x32xf32>
    %281 = arith.divf %279, %280 : vector<2x32xf32>
    %282 = arith.mulf %273, %245 : vector<2x32xf32>
    %283 = arith.mulf %267, %275 : vector<2x32xf32>
    %284 = arith.addf %282, %283 : vector<2x32xf32>
    %285 = math.tanh %284 : vector<2x32xf32>
    %286 = arith.mulf %281, %285 : vector<2x32xf32>
    %c0_86 = arith.constant 0 : index
    %287 = arith.index_cast %256 : i32 to index
    %c0_87 = arith.constant 0 : index
    %288 = vector.load %arg6[%c0_86, %287, %c0_87] : memref<1x16x32xf32, #tpu.memory_space<vmem>>, vector<1x2x32xf32>
    %289 = vector.shape_cast %288 : vector<1x2x32xf32> to vector<2x32xf32>
    %290 = vector.shape_cast %286 : vector<2x32xf32> to vector<1x2x32xf32>
    tpu.vector_store %arg6[%c0_86, %287, %c0_87], %290 {strides = array<i32>} : memref<1x16x32xf32, #tpu.memory_space<vmem>>, vector<1x2x32xf32>,
    %c7_i32_88 = arith.constant 7 : i32
    %c2_i32_89 = arith.constant 2 : i32
    %291 = arith.muli %c2_i32_89, %c7_i32_88 : i32
    %c7_i32_90 = arith.constant 7 : i32
    %292 = arith.subi %c7_i32_90, %291 : i32
    %293 = arith.muli %arg0, %292 : i32
    %294 = arith.addi %c7_i32_88, %293 : i32
    %c2_i32_91 = arith.constant 2 : i32
    %295 = arith.muli %294, %c2_i32_91 : i32
    %296 = arith.index_cast %295 : i32 to index
    %c0_92 = arith.constant 0 : index
    %297 = vector.load %arg7[%296, %c0_92] : memref<16x128xf32, #tpu.memory_space<vmem>>, vector<2x128xf32>
    %298 = arith.truncf %286 : vector<2x32xf32> to vector<2x32xbf16>
    %cst_93 = arith.constant dense<0.000000e+00> : vector<2x128xf32>
    %299 = tpu.matmul %298, %15, %cst_93 {dimension_numbers = #tpu.dot_dimension_numbers<[1], [0], [0], [1], [0, 0, 1, 1], [], []>} : vector<2x32xbf16>, vector<32x128xbf16>, vector<2x128xf32> -> vector<2x128xf32>
    %300 = arith.addf %297, %299 : vector<2x128xf32>
    %301 = vector.extract_strided_slice %300 {offsets = [0, 0], sizes = [2, 32], strides = [1, 1]} : vector<2x128xf32> to vector<2x32xf32>
    %302 = arith.negf %301 : vector<2x32xf32>
    %303 = math.exp %302 : vector<2x32xf32>
    %cst_94 = arith.constant 1.000000e+00 : f32
    %304 = vector.broadcast %cst_94 : f32 to vector<2x32xf32>
    %305 = arith.addf %304, %303 : vector<2x32xf32>
    %306 = arith.divf %304, %305 : vector<2x32xf32>
    %307 = vector.extract_strided_slice %300 {offsets = [0, 32], sizes = [2, 32], strides = [1, 1]} : vector<2x128xf32> to vector<2x32xf32>
    %308 = arith.negf %307 : vector<2x32xf32>
    %309 = math.exp %308 : vector<2x32xf32>
    %cst_95 = arith.constant 1.000000e+00 : f32
    %310 = vector.broadcast %cst_95 : f32 to vector<2x32xf32>
    %311 = arith.addf %310, %309 : vector<2x32xf32>
    %312 = arith.divf %310, %311 : vector<2x32xf32>
    %313 = vector.extract_strided_slice %300 {offsets = [0, 64], sizes = [2, 32], strides = [1, 1]} : vector<2x128xf32> to vector<2x32xf32>
    %314 = math.tanh %313 : vector<2x32xf32>
    %315 = vector.extract_strided_slice %300 {offsets = [0, 96], sizes = [2, 32], strides = [1, 1]} : vector<2x128xf32> to vector<2x32xf32>
    %316 = arith.negf %315 : vector<2x32xf32>
    %317 = math.exp %316 : vector<2x32xf32>
    %cst_96 = arith.constant 1.000000e+00 : f32
    %318 = vector.broadcast %cst_96 : f32 to vector<2x32xf32>
    %319 = arith.addf %318, %317 : vector<2x32xf32>
    %320 = arith.divf %318, %319 : vector<2x32xf32>
    %321 = arith.mulf %312, %284 : vector<2x32xf32>
    %322 = arith.mulf %306, %314 : vector<2x32xf32>
    %323 = arith.addf %321, %322 : vector<2x32xf32>
    %324 = math.tanh %323 : vector<2x32xf32>
    %325 = arith.mulf %320, %324 : vector<2x32xf32>
    %c0_97 = arith.constant 0 : index
    %326 = arith.index_cast %295 : i32 to index
    %c0_98 = arith.constant 0 : index
    %327 = vector.load %arg6[%c0_97, %326, %c0_98] : memref<1x16x32xf32, #tpu.memory_space<vmem>>, vector<1x2x32xf32>
    %328 = vector.shape_cast %327 : vector<1x2x32xf32> to vector<2x32xf32>
    %329 = vector.shape_cast %325 : vector<2x32xf32> to vector<1x2x32xf32>
    tpu.vector_store %arg6[%c0_97, %326, %c0_98], %329 {strides = array<i32>} : memref<1x16x32xf32, #tpu.memory_space<vmem>>, vector<1x2x32xf32>,
    %c8_i32 = arith.constant 8 : i32
    %c0_99 = arith.constant 0 : index
    %c0_100 = arith.constant 0 : index
    %330 = vector.load %arg8[%c0_99, %c0_100] : memref<2x32xf32, #tpu.memory_space<vmem>>, vector<2x32xf32>
    tpu.vector_store %arg8[%c0_99, %c0_100], %325 {strides = array<i32>} : memref<2x32xf32, #tpu.memory_space<vmem>>, vector<2x32xf32>,
    %c0_101 = arith.constant 0 : index
    %c0_102 = arith.constant 0 : index
    %331 = vector.load %arg9[%c0_101, %c0_102] : memref<2x32xf32, #tpu.memory_space<vmem>>, vector<2x32xf32>
    tpu.vector_store %arg9[%c0_101, %c0_102], %323 {strides = array<i32>} : memref<2x32xf32, #tpu.memory_space<vmem>>, vector<2x32xf32>,
    return
  }
  func.func @transform_0(%arg0: i32, %arg1: i32) -> (i32, i32, i32) {
    %c2_i32 = arith.constant 2 : i32
    %0 = arith.muli %c2_i32, %arg1 : i32
    %c0_i32 = arith.constant 0 : i32
    %1 = arith.subi %c0_i32, %0 : i32
    %2 = arith.muli %arg0, %1 : i32
    %3 = arith.addi %arg1, %2 : i32
    %c0_i32_0 = arith.constant 0 : i32
    %c0_i32_1 = arith.constant 0 : i32
    %c0_i32_2 = arith.constant 0 : i32
    return %c0_i32_0, %3, %c0_i32_1 : i32, i32, i32
  }
  func.func @transform_1(%arg0: i32, %arg1: i32) -> (i32, i32, i32) {
    %c0_i32 = arith.constant 0 : i32
    %c0_i32_0 = arith.constant 0 : i32
    %c0_i32_1 = arith.constant 0 : i32
    return %arg0, %c0_i32, %c0_i32_0 : i32, i32, i32
  }
  func.func @transform_2(%arg0: i32, %arg1: i32) -> (i32, i32, i32) {
    %c0_i32 = arith.constant 0 : i32
    %c0_i32_0 = arith.constant 0 : i32
    %c0_i32_1 = arith.constant 0 : i32
    return %arg0, %c0_i32, %c0_i32_0 : i32, i32, i32
  }
  func.func @transform_3(%arg0: i32, %arg1: i32) -> (i32, i32, i32) {
    %c0_i32 = arith.constant 0 : i32
    %c0_i32_0 = arith.constant 0 : i32
    %c0_i32_1 = arith.constant 0 : i32
    return %arg0, %c0_i32, %c0_i32_0 : i32, i32, i32
  }
  func.func @transform_4(%arg0: i32, %arg1: i32) -> (i32, i32, i32) {
    %c2_i32 = arith.constant 2 : i32
    %0 = arith.muli %c2_i32, %arg1 : i32
    %c0_i32 = arith.constant 0 : i32
    %1 = arith.subi %c0_i32, %0 : i32
    %2 = arith.muli %arg0, %1 : i32
    %3 = arith.addi %arg1, %2 : i32
    %c0_i32_0 = arith.constant 0 : i32
    %c0_i32_1 = arith.constant 0 : i32
    return %arg0, %3, %c0_i32_0 : i32, i32, i32
  }
}

module attributes {stable_mosaic.version = 11 : i64} {
  func.func @_head_kernel(%arg0: memref<2x32xf32, #tpu.memory_space<vmem>>, %arg1: memref<2x32xf32, #tpu.memory_space<vmem>>, %arg2: memref<64x4xf32, #tpu.memory_space<vmem>>, %arg3: memref<1x4xf32, #tpu.memory_space<vmem>>, %arg4: memref<2x4xf32, #tpu.memory_space<vmem>>) attributes {dimension_semantics = [], scalar_prefetch = 0 : i64, scratch_operands = 0 : i64, tpu.core_type = #tpu.core_type<tc>} {
    %c0 = arith.constant 0 : index
    %c0_0 = arith.constant 0 : index
    %0 = vector.load %arg0[%c0, %c0_0] : memref<2x32xf32, #tpu.memory_space<vmem>>, vector<2x32xf32>
    %c0_1 = arith.constant 0 : index
    %c0_2 = arith.constant 0 : index
    %1 = vector.load %arg2[%c0_1, %c0_2] : memref<64x4xf32, #tpu.memory_space<vmem>>, vector<32x4xf32>
    %cst = arith.constant dense<0.000000e+00> : vector<2x4xf32>
    %2 = tpu.matmul %0, %1, %cst {dimension_numbers = #tpu.dot_dimension_numbers<[1], [0], [0], [1], [0, 0, 1, 1], [], []>} : vector<2x32xf32>, vector<32x4xf32>, vector<2x4xf32> -> vector<2x4xf32>
    %c0_3 = arith.constant 0 : index
    %c0_4 = arith.constant 0 : index
    %3 = vector.load %arg1[%c0_3, %c0_4] : memref<2x32xf32, #tpu.memory_space<vmem>>, vector<2x32xf32>
    %c32 = arith.constant 32 : index
    %c0_5 = arith.constant 0 : index
    %4 = vector.load %arg2[%c32, %c0_5] : memref<64x4xf32, #tpu.memory_space<vmem>>, vector<32x4xf32>
    %cst_6 = arith.constant dense<0.000000e+00> : vector<2x4xf32>
    %5 = tpu.matmul %3, %4, %cst_6 {dimension_numbers = #tpu.dot_dimension_numbers<[1], [0], [0], [1], [0, 0, 1, 1], [], []>} : vector<2x32xf32>, vector<32x4xf32>, vector<2x4xf32> -> vector<2x4xf32>
    %6 = arith.addf %2, %5 : vector<2x4xf32>
    %c0_7 = arith.constant 0 : index
    %c0_8 = arith.constant 0 : index
    %7 = vector.load %arg3[%c0_7, %c0_8] : memref<1x4xf32, #tpu.memory_space<vmem>>, vector<1x4xf32>
    %8 = vector.broadcast %7 : vector<1x4xf32> to vector<2x4xf32>
    %9 = arith.addf %6, %8 : vector<2x4xf32>
    %c0_9 = arith.constant 0 : index
    %c0_10 = arith.constant 0 : index
    %10 = vector.load %arg4[%c0_9, %c0_10] : memref<2x4xf32, #tpu.memory_space<vmem>>, vector<2x4xf32>
    tpu.vector_store %arg4[%c0_9, %c0_10], %9 {strides = array<i32>} : memref<2x4xf32, #tpu.memory_space<vmem>>, vector<2x4xf32>,
    return
  }
}

</mosaic_0001>

<bundles_post_ra>
// kernel: xlstm_forward.5
= control target key start
LH: loop header
LB: loop body
LE: loop exit
PB: predicated region body
PF: predicated region fallthrough
CT: control target
= control target key end

     0   :  { %v259_v2 = vmov 0.0   ;;  %s323_s0 = inlined_call_operand.vmem [shape: f32[2,32], index: 0, kind: input, shape index: {}]   ;;  %s324_s1 = inlined_call_operand.vmem [shape: f32[2,32], index: 1, kind: input, shape index: {}]   ;;  %s325_s2 = inlined_call_operand.vmem [shape: f32[64,4], index: 2, kind: input, shape index: {}]   ;;  %s326_s3 = inlined_call_operand.vmem [shape: f32[1,4], index: 3, kind: input, shape index: {}]   ;;  %s327_s4 = inlined_call_operand.hbm [shape: f32[2,4], index: 4, kind: output, shape index: {}]  }
   0x1   :  { %v27_v0 = vld [vmem:[%s325_s2 + $0x38] sm:$0xff]  ;;  %212 = vmatprep.subr.mxu0 %v259_v2  ;;  %223 = vmatprep.subr.mxu1 %v259_v2  ;;  %v26_v3 = vld [vmem:[%s325_s2 + $0x30] sm:$0xff]  ;;  %v25_v5 = vld [vmem:[%s325_s2 + $0x28] sm:$0xff] }
   0x2   :  { %v22_v1 = vld [vmem:[%s325_s2 + $0x18] sm:$0xff]  ;;  %v21_v4 = vld [vmem:[%s325_s2 + $0x10] sm:$0xff]  ;;  %213 = vmatpush3.msra.mxu0 %v27_v0  ;;  %v20_v6 = vld [vmem:[%s325_s2 + $0x8] sm:$0xff] }
   0x3   :  { %224 = vmatpush3.msra.mxu1 %v22_v1  ;;  %214 = vmatprep.subr.mxu0 %v259_v2 }
   0x4   :  { %225 = vmatprep.subr.mxu1 %v259_v2 }
   0x5   :  { %9 = vsyncpa [#allocation3], 0  ;;  %215 = vmatpush3.msra.mxu0 %v26_v3  ;;  %226 = vmatpush3.msra.mxu1 %v21_v4  ;;  %v24_v7 = vld [vmem:[%s325_s2 + $0x20] sm:$0xff]  ;;  %vm28_vm0 = vcmask 261120   ;;  %vm260_vm1 = vmmov 0   ;;  %s261_s10 = smov [#allocation2]  }
   0x6   :  { %216 = vmatprep.subr.mxu0 %v259_v2  ;;  %227 = vmatprep.subr.mxu1 %v259_v2  ;;  %v19_v8 = vld [vmem:[%s325_s2] sm:$0xff]  ;;  %vm183_vm2 = vcmask 25600  }
   0x7   :  { %217 = vmatpush3.msra.mxu0 %v25_v5  ;;  %228 = vmatpush3.msra.mxu1 %v20_v6  ;;  %v23_v9 = vld [vmem:[%s324_s1] sm:$0x3]  ;;  %s191_s1 = sshll.u32 %s261_s10, 4  ;;  %s192_s1 = int_to_ptr.vmem [resolvable:$true] %s191_s1 }
   0x8   :  { %218 = vmatprep.subr.mxu0 %v259_v2  ;;  %229 = vmatprep.subr.mxu1 %v259_v2  ;;  %v18_v10 = vld [vmem:[%s323_s0] sm:$0x3]  ;;  %s237_s0 = scalar_lea.vmem %s192_s1, 32  ;;  %p242_p1 = scmp.lt.s32.totalorder %s192_s1, %s192_s1 }
   0x9   :  { %219 = vmatpush3.msra.mxu0 %v24_v7  ;;  %220 = vmatprep.mubr.msk.f32.mxu0 %vm260_vm1, %v259_v2  ;;  %v201_v13 = vld [vmem:[%s326_s3] ss:$0 sm:$0xff]  ;;  %p238_p0 = scmp.ne.s32.totalorder %s192_s1, %s237_s0  ;;  %p243_p2 = scmp.lt.s32.totalorder %s237_s0, %s237_s0 }
   0xa   :  { %230 = vmatpush3.msra.mxu1 %v19_v8  ;;  %231 = vmatprep.mubr.msk.f32.mxu1 %vm260_vm1, %v259_v2 }
   0xb   :  { %221 = vmatmul.mubr.msk.f32.vlgmr.msra.gmra.mxu0 %vm28_vm0, %v23_v9  ;;  %232 = vmatmul.mubr.msk.f32.vlgmr.msra.gmra.mxu1 %vm28_vm0, %v18_v10  ;;  %p244_p3 = por %p243_p2, %p242_p1 }
   0xd   :  { %p245_p4 = pnand %p244_p3, %p238_p0 }
  0xcb   :  { %v98_v11 = vpop.f32.mrf.mxu0  ;;  %v171_v12 = vpop.f32.mrf.mxu1 }
  0xcc   :  { %v172_v14 = vadd.f32 %v171_v12, %v98_v11 }
  0xcd   :  { %v222_v15 = vpop.f32.mrf.mxu0  ;;  %v233_v16 = vpop.f32.mrf.mxu1 }
  0xce   :  { %v182_v17 = vadd.f32 %v201_v13, %v172_v14 }
  0xd0   :  { %184 = vst.msk [vmem:[#allocation2] sm:$0x3] %vm183_vm2, %v182_v17 }
  0xd1   :  { %248 = shalt.err (!%p245_p4)
}
  0xd2   :  { %194 = dma.vmem_to_hbm [thread:$0]  %s192_s1, 32, %s327_s4, [#allocation3]  }
  0xd3   :  { %257 = dma.done.wait [#allocation3], 32  }
  0xd4   :  { %258 = vsyncadd [#allocation3], 4294967264 }
  0xd5   :  { %198 = vsyncpa [#allocation3], 1 }

// kernel: xlstm_forward.3
= control target key start
LH: loop header
LB: loop body
LE: loop exit
PB: predicated region body
PF: predicated region fallthrough
CT: control target
= control target key end

     0   :  { %9 = vsyncpa [#allocation6], 0  ;;  %s2012_s0 = inlined_call_operand.vmem [shape: f32[1,16,16], index: 0, kind: input, shape index: {}]   ;;  %s2013_s1 = inlined_call_operand.hbm [shape: bf16[2,16,128], index: 1, kind: input, shape index: {}]   ;;  %s2014_s2 = inlined_call_operand.vmem [shape: bf16[2,32,128], index: 2, kind: input, shape index: {}]   ;;  %s2015_s3 = inlined_call_operand.vmem [shape: f32[2,1,128], index: 3, kind: input, shape index: {}]   ;;  %s2016_s4 = inlined_call_operand.vmem [shape: f32[2,16,32], index: 4, kind: output, shape index: {}]  }
   0x1   :  { %11 = vsyncpa [#allocation6 + $0x1], 0  ;;  %s1699_s15 = smov 0   ;;  %s1701_s16 = smov 0  }
   0x2   :  { %s1703_s17 = smov 0   ;;  %s1705_s18 = smov 0  }
   0x3   :  { %s1707_s19 = smov 0   ;;  %s1709_s20 = smov 0  }
   0x4 LB: > { %s1296_s21 = sadd.s32 4294967295, %s1664_s20   ;;  %s29_s22 = sadd.s32 1, %s1660_s19  ;;  %s1664_s20 = sphi %s1709_s20, %s17_s20   ;;  %s1660_s19 = sphi %s1707_s19, %s2024_s19   ;;  %s1656_s18 = sphi %s1705_s18, %s2023_s18   ;;  %s1652_s17 = sphi %s1703_s17, %s2022_s17   ;;  %s1648_s16 = sphi %s1701_s16, %s2021_s16   ;;  %s1644_s15 = sphi %s1699_s15, %s2020_s15  }
   0x5   : > { %p31_p0 = scmp.ge.s32.totalorder %s29_s22, 2  ;;  %s70_s23 = sadd.s32 1, %s1652_s17 }
   0x6   : > { %p77_p1 = scmp.ne.s32.totalorder %s1652_s17, %s1648_s16  ;;  %p78_p2 = scmp.eq.s32.totalorder %s1664_s20, 0 }
   0x7   : > { %s2026_s22 = smov (%p31_p0, %s29_s22), 0  ;;  %p83_p4 = scmp.ne.s32.totalorder %s1648_s16, %s1644_s15 }
   0x8   : > { %p1735_p3 = por %p78_p2, %p77_p1  ;;  %s67_s25 = ssub.s32 %s1660_s19, %s2026_s22 }
   0x9   : > { %p84_p5 = scmp.eq.s32.totalorder %s1296_s21, 0  ;;  %p68_p6 = scmp.eq.s32.totalorder %s67_s25, 0 }
   0xa   : > { %p1463_p8 = scmp.lt.s32.totalorder %s1664_s20, 2  ;;  %s212_s28 = sand.u32 1, %s1652_s17  }
   0xb   : > { %p1742_p7 = por %p84_p5, %p83_p4  ;;  %s1358_s29 = sshll.u32 %s1660_s19, 7 }
   0xc   : > { %s1748_s27 = scalar_select %p68_p6, %s1652_s17, %s70_s23  }
   0xd   : > { %s1301_s30 = sshll.u32 %s212_s28, 3  ;;  %s222_s7 = scalar_lea.hbm %s2013_s1, %s1358_s29 }
   0xe   : > { %s216_s8 = scalar_lea.vmem [#allocation5], %s1301_s30  ;;  %p1757_p9 = pnand %p1463_p8, %p1735_p3 }
   0xf   : > { %s223_s9 = sshll.u32 %s216_s8, 4  ;;  %s213_s11 = scalar_lea.sflag [#allocation6], %s212_s28  ;;  %s224_s9 = int_to_ptr.vmem [resolvable:$true] %s223_s9 }
  0x10   : > { %p1588_p10 = pneg %p1757_p9  ;;  %s1599_s12 = scalar_lea.vmem %s224_s9, 128 }
  0x11   : > { %p1600_p11 = scmp.ne.s32.totalorder %s224_s9, %s1599_s12  ;;  %s1666_s13 = smov [#allocation5]  }
  0x12   : > { %s1604_s14 = sshll.u32 %s1666_s13, 4  ;;  %s1605_s14 = int_to_ptr.vmem [resolvable:$false] %s1604_s14 }
  0x13   : > { %p1602_p12 = pnand %p1600_p11, %p1588_p10  ;;  %s1606_s15 = scalar_lea.vmem %s1605_s14, 256 }
  0x14   : > { %p1607_p0 = scmp.lt.s32.totalorder %s224_s9, %s1605_s14  ;;  %p1608_p1 = scmp.lt.s32.totalorder %s1606_s15, %s1599_s12 }
  0x15   : > { %p1603_p13 = pneg %p1602_p12 }
  0x16   : > { %p1609_p2 = por %p1608_p1, %p1607_p0 }
  0x18   : > { %p1610_p3 = pnand %p1609_p2, %p1603_p13 }
  0x1a   : > { %1613 = shalt.err (!%p1610_p3)
}
  0x1b   : > { %s1667_s21 = smov 64   ;;  %s1668_s23 = smov 4  }
  0x1c   : > { %1462 = dma.hbm_to_vmem [thread:$0]  (!%p1757_p9), %s222_s7, 128, %s224_s9, %s213_s11, %s1667_s21, %s1667_s21, %s1668_s23  }
  0x1d   : > { %p1304_p4 = scmp.ge.s32.totalorder %s1664_s20, 1  ;;  %p245_p5 = scmp.lt.s32.totalorder %s1664_s20, 3 }
  0x1f   : > { %p246_p6 = pnand %p1304_p4, %p245_p5 }
  0x20   : > { %s251_s24 = sand.u32 (!%p246_p6), 1, %s1648_s16  }
  0x21   : > { %249 = sbr.rel (%p246_p6) target bundleno = 5586 (0x15d2), region = 36  ;;  %s1305_s25 = sshll.u32 (!%p246_p6), %s251_s24, 3 }
  0x22   : > { %s252_s28 = scalar_lea.sflag (!%p246_p6), [#allocation6], %s251_s24  ;;  %s255_s29 = scalar_lea.vmem (!%p246_p6), [#allocation5], %s1305_s25 }
  0x26   : > { %1639 = dma.done.wait (%p1742_p7), %s252_s28, 128  }
  0x27   : > { %1641 = vsyncadd (%p1742_p7), %s252_s28, 4294967168  ;;  %p319_p8 = scmp.lt.s32.totalorder %s1656_s18, 1  ;;  %vm350_vm0 = vcmask 254976   ;;  %v1669_v0 = vmov 0.0   ;;  %vm1670_vm1 = vmmov 0   ;;  %v1519_v1 = vld [vmem:[%s255_s29] sm:$0xff]  }
  0x28   : > { %1387 = vmatprep.subr.bf16.mxu0 %v1669_v0  ;;  %1389 = vmatprep.mubr.msk.bf16.mxu0 %vm1670_vm1, %v1669_v0  ;;  %351 = vst.msk [vmem:[#allocation3] sm:$0x3] %vm350_vm0, %v1669_v0  ;;  %352 = vst.msk [vmem:[#allocation4] sm:$0x3] %vm350_vm0, %v1669_v0  ;;  %v353_v2 = vld [vmem:[%s2012_s0] sm:$0xff]  ;;  %v354_v3 = vld [vmem:[%s2012_s0 + $0x8] sm:$0xff] }
  0x29   : > { %1393 = vmatprep.subr.bf16.mxu1 %v1669_v0  ;;  %s1782_s26 = scalar_select %p319_p8, %s1656_s18, 1  ;;  %1397 = vmatprep.mubr.msk.bf16.mxu1 %vm1670_vm1, %v1669_v0  ;;  %v355_v4 = vpack.c.bf16 %v354_v3, %v353_v2  ;;  %vm371_vm2 = vcmask 130048   ;;  %vm440_vm3 = vcmask 261120  }
  0x2a   : > { %1388 = vmatpush3.bf16.msra.mxu0 %v1519_v1  ;;  %s424_s15 = smul.u32 14, %s1656_s18  ;;  %s1671_s23 = smov 64  }
  0x2b   : > { %s1359_s30 = sshll.u32 %s1782_s26, 4  ;;  %1401 = vmatprep.subr.bf16.mxu0 %v1669_v0  ;;  %s326_s14 = scalar_lea.vmem %s2015_s3, %s1782_s26 }
  0x2c   : > { %s323_s7 = scalar_lea.vmem %s2014_s2, %s1359_s30  ;;  %v1310_v9 = vld [vmem:[%s326_s14] ss:$0 sm:$0xff]  ;;  %s425_s21 = scalar_lea.vmem [#allocation2], %s424_s15 }
  0x2d   : > { %v1798_v5 = vld [vmem:[%s323_s7 + $0x8] sm:$0xff]   ;;  %v1802_v6 = vld [vmem:[%s323_s7] sm:$0xff]   ;;  %1390 = vmatmul.mubr.msk.bf16.vlgmr.msra.gmra.mxu0 %vm371_vm2, %v355_v4  ;;  %s1672_s24 = smov 32   ;;  %s1317_s25 = smul.u32 10, %s1656_s18 }
  0x2e   : > { %1394 = vmatpush3.bf16.msra.mxu1 %v1798_v5  ;;  %1402 = vmatpush3.bf16.msra.mxu0 %v1798_v5  ;;  %s1323_s29 = smul.u32 6, %s1656_s18  ;;  %s1329_s6 = sshll.u32 %s1656_s18, 1 }
  0x2f   : > { %v422_v7 = vld [vmem:[#allocation3] sm:$0x3]  ;;  %1395 = vmatprep.subr.bf16.mxu1 %v1669_v0  ;;  %1405 = vmatprep.mubr.msk.bf16.mxu0 %vm1670_vm1, %v1669_v0  ;;  %v423_v23 = vld [vmem:[#allocation4] sm:$0x3]  ;;  %s1190_s28 = scalar_lea.vmem [#allocation2], %s1317_s25  ;;  %s1205_s7 = scalar_lea.vmem [#allocation2], %s1329_s6 }
  0x30   : > { %v427_v8 = vpack.c.bf16 %v422_v7, %v422_v7  ;;  %1403 = vmatprep.subr.bf16.mxu0 %v1669_v0  ;;  %s1198_s5 = scalar_lea.vmem [#allocation2], %s1323_s29  ;;  %s768_s8 = ssub.s32 4, %s1656_s18 }
  0x31   : > { %s1897_s9 = sshll.u32 %s768_s8, 1  ;;  %s1338_s11 = smul.u32 4294967290, %s1656_s18 }
  0x32   : > { %1396 = vmatpush3.bf16.msra.mxu1 %v1802_v6  ;;  %1404 = vmatpush3.bf16.msra.mxu0 %v1802_v6  ;;  %s770_s10 = scalar_lea.vmem [#allocation2], %s1897_s9  ;;  %s1344_s13 = smul.u32 4294967286, %s1656_s18 }
  0x33   : > { %1409 = vmatprep.subr.bf16.mxu1 %v1669_v0  ;;  %1417 = vmatprep.subr.bf16.mxu0 %v1669_v0  ;;  %s1216_s12 = scalar_lea.vmem [#allocation2], %s1338_s11  ;;  %s1951_s8 = scalar_lea.vmem %s2016_s4, %s1359_s30 }
  0x34   : > { %s1224_s14 = scalar_lea.vmem [#allocation2], %s1344_s13  ;;  %s1194_s26 = scalar_lea.vmem %s1951_s8, %s1317_s25 }
  0x35   : > { %1398 = vmatmul.mubr.msk.bf16.vlgmr.msra.gmra.mxu1 %vm440_vm3, %v427_v8  ;;  %s1202_s30 = scalar_lea.vmem %s1951_s8, %s1323_s29  ;;  %s1228_s25 = scalar_lea.vmem %s1951_s8, %s1344_s13 }
  0x36   : > { %1410 = vmatpush3.bf16.msra.mxu1 %v1798_v5  ;;  %1413 = vmatprep.mubr.msk.bf16.mxu1 %vm1670_vm1, %v1669_v0 }
  0x37   : > { %1411 = vmatprep.subr.bf16.mxu1 %v1669_v0 }
  0x3a   : > { %1412 = vmatpush3.bf16.msra.mxu1 %v1802_v6 }
  0x3b   : > { %1425 = vmatprep.subr.bf16.mxu1 %v1669_v0 }
  0xed   : > { %v409_v10 = vpop.f32.mrf.mxu0 }
  0xee   : > { %v410_v11 = vadd.f32 %v1310_v9, %v409_v10 }
  0xef   : > { %v1391_v12 = vpop.f32.mrf.mxu0 }
  0xf0   : > { %416 = vst [vmem:[#allocation2] sm:$0xff] %v410_v11 }
  0xf1   : > { %v412_v13 = vpop.f32.mrf.mxu0 }
  0xf2   : > { %v413_v14 = vadd.f32 %v1310_v9, %v412_v13 }
  0xf3   : > { %v1392_v15 = vpop.f32.mrf.mxu0 }
  0xf4   : > { %417 = vst [vmem:[#allocation2 + $0x8] sm:$0xff] %v413_v14 }
  0xf5   : > { %v478_v16 = vpop.f32.mrf.mxu1 }
  0xf7   : > { %v1399_v17 = vpop.f32.mrf.mxu1 }
  0xf9   : > { %v481_v18 = vpop.f32.mrf.mxu1 }
  0xfb   : > { %v1400_v19 = vpop.f32.mrf.mxu1  ;;  %v426_v20 = vld [vmem:[%s425_s21] sm:$0x3]  ;;  %v1318_v39 = vld [vmem:[%s1190_s28 + $0x2] sm:$0x3]  ;;  %v1324_v60 = vld [vmem:[%s1198_s5 + $0x4] sm:$0x3] }
  0xfc   : > { %v484_v21 = vadd.f32 %v478_v16, %v426_v20  ;;  %v1330_v20 = vld [vmem:[%s1205_s7 + $0x6] sm:$0x3]  ;;  %s1350_s21 = smul.u32 4294967282, %s1656_s18 }
  0xfe   : > { %1522 = vtanh.f32 %v484_v21  ;;  %v1316_v24 = vmul.f32 -1.442695, %v484_v21  ;;  %s1232_s28 = scalar_lea.vmem [#allocation2], %s1350_s21 }
 0x100   : > { %1524 = vpow2.f32 %v1316_v24 }
 0x10b   : > { %v1523_v22 = vpop.eup %1522 }
 0x10c   : > { %498 = vrot.lane.b32.xlu0 %v1523_v22, %s1671_s23 }
 0x10d   : > { %v1525_v25 = vpop.eup %1524 }
 0x10e   : > { %v488_v26 = vadd.f32 1.0, %v1525_v25 }
 0x110   : > { %493 = vrot.lane.b32.xlu0 %v423_v23, %s1672_s24  ;;  %1526 = vrcp.f32 %v488_v26 }
 0x11d   : > { %v1527_v27 = vpop.eup %1526 }
 0x17e   : > { %v499_v28 = vpop.permute.xlu0 %498 }
 0x17f   : > { %v501_v29 = vmul.f32 %v1527_v27, %v499_v28 }
 0x181   : > { %503 = vrot.lane.b32.xlu1 %v501_v29, %s1672_s24 }
 0x182   : > { %v494_v30 = vpop.permute.xlu0 %493 }
 0x183   : > { %v496_v31 = vmul.f32 %v1527_v27, %v494_v30 }
 0x1f3   : > { %v504_v32 = vpop.permute.xlu1 %503 }
 0x1f4   : > { %v506_v33 = vadd.f32 %v504_v32, %v496_v31 }
 0x1f6   : > { %1528 = vtanh.f32 %v506_v33 }
 0x203   : > { %v1529_v34 = vpop.eup %1528 }
 0x204   : > { %509 = vrot.lane.b32.xlu1 %v1529_v34, %s1671_s23 }
 0x276   : > { %v510_v35 = vpop.permute.xlu1 %509 }
 0x277   : > { %v1831_v36 = vmul.f32 %v1527_v27, %v510_v35 }
 0x279   : > { %v525_v37 = vpack.c.bf16 %v1831_v36, %v1831_v36 }
 0x27b   : > { %527 = vrot.lane.b32.xlu0 %v525_v37, %s1672_s24 }
 0x2ed   : > { %v528_v38 = vpop.permute.xlu0 %527 }
 0x2ee   : > { %1406 = vmatmul.mubr.msk.bf16.vlgmr.msra.gmra.mxu0 %vm440_vm3, %v528_v38 }
 0x2ef   : > { %1418 = vmatpush3.bf16.msra.mxu0 %v1798_v5  ;;  %1421 = vmatprep.mubr.msk.bf16.mxu0 %vm1670_vm1, %v1669_v0 }
 0x2f0   : > { %1419 = vmatprep.subr.bf16.mxu0 %v1669_v0 }
 0x2f3   : > { %1420 = vmatpush3.bf16.msra.mxu0 %v1802_v6 }
 0x2f4   : > { %1433 = vmatprep.subr.bf16.mxu0 %v1669_v0 }
 0x3ae   : > { %v566_v40 = vpop.f32.mrf.mxu0 }
 0x3af   : > { %v572_v41 = vadd.f32 %v1318_v39, %v566_v40 }
 0x3b0   : > { %v1407_v42 = vpop.f32.mrf.mxu0 }
 0x3b1   : > { %1530 = vtanh.f32 %v572_v41  ;;  %v1320_v46 = vmul.f32 -1.442695, %v572_v41  ;;  %v771_v42 = vld [vmem:[%s770_s10] sm:$0x3]  ;;  %s517_s10 = scalar_lea.vmem %s1951_s8, %s424_s15  ;;  %s1208_s15 = scalar_lea.vmem %s1951_s8, %s1329_s6 }
 0x3b2   : > { %v569_v43 = vpop.f32.mrf.mxu0 }
 0x3b3   : > { %1532 = vpow2.f32 %v1320_v46 }
 0x3b4   : > { %v1408_v44 = vpop.f32.mrf.mxu0 }
 0x3be   : > { %v1531_v45 = vpop.eup %1530 }
 0x3bf   : > { %582 = vrot.lane.b32.xlu1 %v1531_v45, %s1671_s23 }
 0x3c0   : > { %v1533_v47 = vpop.eup %1532 }
 0x3c1   : > { %v576_v48 = vadd.f32 1.0, %v1533_v47 }
 0x3c3   : > { %1534 = vrcp.f32 %v576_v48 }
 0x3d0   : > { %v1535_v49 = vpop.eup %1534 }
 0x3d1   : > { %v580_v52 = vmul.f32 %v1535_v49, %v506_v33 }
 0x431   : > { %v583_v50 = vpop.permute.xlu1 %582 }
 0x432   : > { %v585_v51 = vmul.f32 %v1535_v49, %v583_v50 }
 0x434   : > { %587 = vrot.lane.b32.xlu0 %v585_v51, %s1672_s24 }
 0x4a6   : > { %v588_v53 = vpop.permute.xlu0 %587 }
 0x4a7   : > { %v590_v54 = vadd.f32 %v588_v53, %v580_v52 }
 0x4a9   : > { %1536 = vtanh.f32 %v590_v54 }
 0x4b6   : > { %v1537_v55 = vpop.eup %1536 }
 0x4b7   : > { %593 = vrot.lane.b32.xlu1 %v1537_v55, %s1671_s23 }
 0x529   : > { %v594_v56 = vpop.permute.xlu1 %593 }
 0x52a   : > { %v1849_v57 = vmul.f32 %v1535_v49, %v594_v56 }
 0x52c   : > { %v608_v58 = vpack.c.bf16 %v1849_v57, %v1849_v57 }
 0x52e   : > { %610 = vrot.lane.b32.xlu0 %v608_v58, %s1672_s24 }
 0x5a0   : > { %v611_v59 = vpop.permute.xlu0 %610 }
 0x5a1   : > { %1414 = vmatmul.mubr.msk.bf16.vlgmr.msra.gmra.mxu1 %vm440_vm3, %v611_v59 }
 0x5a2   : > { %1426 = vmatpush3.bf16.msra.mxu1 %v1798_v5  ;;  %1429 = vmatprep.mubr.msk.bf16.mxu1 %vm1670_vm1, %v1669_v0 }
 0x5a3   : > { %1427 = vmatprep.subr.bf16.mxu1 %v1669_v0 }
 0x5a6   : > { %1428 = vmatpush3.bf16.msra.mxu1 %v1802_v6 }
 0x5a7   : > { %1441 = vmatprep.subr.bf16.mxu1 %v1669_v0 }
 0x661   : > { %v649_v61 = vpop.f32.mrf.mxu1 }
 0x662   : > { %v655_v62 = vadd.f32 %v1324_v60, %v649_v61 }
 0x663   : > { %v1415_v63 = vpop.f32.mrf.mxu1 }
 0x664   : > { %1538 = vtanh.f32 %v655_v62  ;;  %v1326_v4 = vmul.f32 -1.442695, %v655_v62 }
 0x665   : > { %v652_v1 = vpop.f32.mrf.mxu1 }
 0x666   : > { %1540 = vpow2.f32 %v1326_v4  ;;  %v1339_v1 = vld [vmem:[%s1216_s12 + $0xa] sm:$0x3]  ;;  %s1673_s12 = smov 96  }
 0x667   : > { %v1416_v2 = vpop.f32.mrf.mxu1 }
 0x671   : > { %v1539_v3 = vpop.eup %1538 }
 0x672   : > { %665 = vrot.lane.b32.xlu1 %v1539_v3, %s1671_s23 }
 0x673   : > { %v1541_v7 = vpop.eup %1540 }
 0x674   : > { %v659_v8 = vadd.f32 1.0, %v1541_v7 }
 0x676   : > { %1542 = vrcp.f32 %v659_v8 }
 0x683   : > { %v1543_v9 = vpop.eup %1542 }
 0x684   : > { %v663_v12 = vmul.f32 %v1543_v9, %v590_v54 }
 0x6e4   : > { %v666_v10 = vpop.permute.xlu1 %665 }
 0x6e5   : > { %v668_v11 = vmul.f32 %v1543_v9, %v666_v10 }
 0x6e7   : > { %670 = vrot.lane.b32.xlu0 %v668_v11, %s1672_s24 }
 0x759   : > { %v671_v13 = vpop.permute.xlu0 %670 }
 0x75a   : > { %v673_v14 = vadd.f32 %v671_v13, %v663_v12 }
 0x75c   : > { %1544 = vtanh.f32 %v673_v14 }
 0x769   : > { %v1545_v15 = vpop.eup %1544 }
 0x76a   : > { %676 = vrot.lane.b32.xlu1 %v1545_v15, %s1671_s23 }
 0x7dc   : > { %v677_v16 = vpop.permute.xlu1 %676 }
 0x7dd   : > { %v1867_v17 = vmul.f32 %v1543_v9, %v677_v16 }
 0x7df   : > { %v690_v18 = vpack.c.bf16 %v1867_v17, %v1867_v17 }
 0x7e1   : > { %692 = vrot.lane.b32.xlu0 %v690_v18, %s1672_s24 }
 0x853   : > { %v693_v19 = vpop.permute.xlu0 %692 }
 0x854   : > { %1422 = vmatmul.mubr.msk.bf16.vlgmr.msra.gmra.mxu0 %vm440_vm3, %v693_v19 }
 0x855   : > { %1434 = vmatpush3.bf16.msra.mxu0 %v1798_v5  ;;  %1437 = vmatprep.mubr.msk.bf16.mxu0 %vm1670_vm1, %v1669_v0 }
 0x856   : > { %1435 = vmatprep.subr.bf16.mxu0 %v1669_v0 }
 0x859   : > { %1436 = vmatpush3.bf16.msra.mxu0 %v1802_v6 }
 0x85a   : > { %1449 = vmatprep.subr.bf16.mxu0 %v1669_v0 }
 0x914   : > { %v731_v21 = vpop.f32.mrf.mxu0 }
 0x915   : > { %v737_v22 = vadd.f32 %v1330_v20, %v731_v21 }
 0x916   : > { %v1423_v23 = vpop.f32.mrf.mxu0 }
 0x917   : > { %1546 = vtanh.f32 %v737_v22  ;;  %v1332_v27 = vmul.f32 -1.442695, %v737_v22  ;;  %v1345_v22 = vld [vmem:[%s1224_s14 + $0xc] sm:$0x3]  ;;  %s1220_s14 = scalar_lea.vmem %s1951_s8, %s1338_s11 }
 0x918   : > { %v734_v24 = vpop.f32.mrf.mxu0 }
 0x919   : > { %1548 = vpow2.f32 %v1332_v27 }
 0x91a   : > { %v1424_v25 = vpop.f32.mrf.mxu0 }
 0x924   : > { %v1547_v26 = vpop.eup %1546 }
 0x925   : > { %747 = vrot.lane.b32.xlu1 %v1547_v26, %s1671_s23 }
 0x926   : > { %v1549_v28 = vpop.eup %1548 }
 0x927   : > { %v741_v29 = vadd.f32 1.0, %v1549_v28 }
 0x929   : > { %1550 = vrcp.f32 %v741_v29 }
 0x936   : > { %v1551_v30 = vpop.eup %1550 }
 0x937   : > { %v745_v33 = vmul.f32 %v1551_v30, %v673_v14 }
 0x997   : > { %v748_v31 = vpop.permute.xlu1 %747 }
 0x998   : > { %v750_v32 = vmul.f32 %v1551_v30, %v748_v31 }
 0x99a   : > { %752 = vrot.lane.b32.xlu0 %v750_v32, %s1672_s24 }
 0xa0c   : > { %v753_v34 = vpop.permute.xlu0 %752 }
 0xa0d   : > { %v755_v35 = vadd.f32 %v753_v34, %v745_v33 }
 0xa0f   : > { %1552 = vtanh.f32 %v755_v35 }
 0xa1c   : > { %v1553_v37 = vpop.eup %1552 }
 0xa1d   : > { %758 = vrot.lane.b32.xlu1 %v1553_v37, %s1671_s23 }
 0xa8f   : > { %v759_v38 = vpop.permute.xlu1 %758 }
 0xa90   : > { %v1885_v39 = vmul.f32 %v1551_v30, %v759_v38 }
 0xa92   : > { %v772_v40 = vpack.c.bf16 %v1885_v39, %v1885_v39 }
 0xa94   : > { %774 = vrot.lane.b32.xlu0 %v772_v40, %s1672_s24 }
 0xb06   : > { %v775_v41 = vpop.permute.xlu0 %774 }
 0xb07   : > { %1430 = vmatmul.mubr.msk.bf16.vlgmr.msra.gmra.mxu1 %vm440_vm3, %v775_v41 }
 0xb08   : > { %1442 = vmatpush3.bf16.msra.mxu1 %v1798_v5  ;;  %1445 = vmatprep.mubr.msk.bf16.mxu1 %vm1670_vm1, %v1669_v0 }
 0xb09   : > { %1443 = vmatprep.subr.bf16.mxu1 %v1669_v0 }
 0xb0c   : > { %1444 = vmatpush3.bf16.msra.mxu1 %v1802_v6 }
 0xbc7   : > { %v813_v43 = vpop.f32.mrf.mxu1 }
 0xbc8   : > { %v819_v44 = vadd.f32 %v813_v43, %v771_v42 }
 0xbc9   : > { %v1431_v45 = vpop.f32.mrf.mxu1 }
 0xbca   : > { %1554 = vtanh.f32 %v819_v44  ;;  %v1337_v49 = vmul.f32 -1.442695, %v819_v44  ;;  %v1351_v45 = vld [vmem:[%s1232_s28 + $0xe] sm:$0x3] }
 0xbcb   : > { %v816_v46 = vpop.f32.mrf.mxu1 }
 0xbcc   : > { %1556 = vpow2.f32 %v1337_v49 }
 0xbcd   : > { %v1432_v47 = vpop.f32.mrf.mxu1 }
 0xbd7   : > { %v1555_v48 = vpop.eup %1554 }
 0xbd8   : > { %829 = vrot.lane.b32.xlu1 %v1555_v48, %s1671_s23 }
 0xbd9   : > { %v1557_v50 = vpop.eup %1556 }
 0xbda   : > { %v823_v51 = vadd.f32 1.0, %v1557_v50 }
 0xbdc   : > { %1558 = vrcp.f32 %v823_v51 }
 0xbe9   : > { %v1559_v52 = vpop.eup %1558 }
 0xbea   : > { %v827_v55 = vmul.f32 %v1559_v52, %v755_v35 }
 0xc4a   : > { %v830_v53 = vpop.permute.xlu1 %829 }
 0xc4b   : > { %v832_v54 = vmul.f32 %v1559_v52, %v830_v53 }
 0xc4d   : > { %834 = vrot.lane.b32.xlu0 %v832_v54, %s1672_s24 }
 0xcbf   : > { %v835_v56 = vpop.permute.xlu0 %834 }
 0xcc0   : > { %v837_v58 = vadd.f32 %v835_v56, %v827_v55 }
 0xcc2   : > { %1560 = vtanh.f32 %v837_v58 }
 0xccf   : > { %v1561_v59 = vpop.eup %1560 }
 0xcd0   : > { %840 = vrot.lane.b32.xlu1 %v1561_v59, %s1671_s23 }
 0xd42   : > { %v841_v60 = vpop.permute.xlu1 %840 }
 0xd43   : > { %v1903_v61 = vmul.f32 %v1559_v52, %v841_v60 }
 0xd45   : > { %v855_v62 = vpack.c.bf16 %v1903_v61, %v1903_v61 }
 0xd47   : > { %857 = vrot.lane.b32.xlu0 %v855_v62, %s1672_s24 }
 0xdb9   : > { %v858_v63 = vpop.permute.xlu0 %857 }
 0xdba   : > { %1438 = vmatmul.mubr.msk.bf16.vlgmr.msra.gmra.mxu0 %vm440_vm3, %v858_v63 }
 0xdbb   : > { %1450 = vmatpush3.bf16.msra.mxu0 %v1798_v5  ;;  %1453 = vmatprep.mubr.msk.bf16.mxu0 %vm1670_vm1, %v1669_v0 }
 0xdbc   : > { %1451 = vmatprep.subr.bf16.mxu0 %v1669_v0 }
 0xdbf   : > { %1452 = vmatpush3.bf16.msra.mxu0 %v1802_v6 }
 0xe7a   : > { %v896_v2 = vpop.f32.mrf.mxu0 }
 0xe7b   : > { %v902_v3 = vadd.f32 %v1339_v1, %v896_v2 }
 0xe7c   : > { %v1439_v4 = vpop.f32.mrf.mxu0 }
 0xe7d   : > { %1562 = vtanh.f32 %v902_v3  ;;  %v1341_v5 = vmul.f32 -1.442695, %v902_v3 }
 0xe7e   : > { %v899_v7 = vpop.f32.mrf.mxu0 }
 0xe7f   : > { %1564 = vpow2.f32 %v1341_v5 }
 0xe80   : > { %v1440_v8 = vpop.f32.mrf.mxu0 }
 0xe8a   : > { %v1563_v9 = vpop.eup %1562 }
 0xe8b   : > { %912 = vrot.lane.b32.xlu1 %v1563_v9, %s1671_s23 }
 0xe8c   : > { %v1565_v10 = vpop.eup %1564 }
 0xe8d   : > { %v906_v11 = vadd.f32 1.0, %v1565_v10 }
 0xe8f   : > { %1566 = vrcp.f32 %v906_v11 }
 0xe9c   : > { %v1567_v0 = vpop.eup %1566 }
 0xe9d   : > { %v910_v13 = vmul.f32 %v1567_v0, %v837_v58 }
 0xefd   : > { %v913_v6 = vpop.permute.xlu1 %912 }
 0xefe   : > { %v915_v12 = vmul.f32 %v1567_v0, %v913_v6 }
 0xf00   : > { %917 = vrot.lane.b32.xlu0 %v915_v12, %s1672_s24 }
 0xf72   : > { %v918_v14 = vpop.permute.xlu0 %917 }
 0xf73   : > { %v920_v15 = vadd.f32 %v918_v14, %v910_v13 }
 0xf75   : > { %1568 = vtanh.f32 %v920_v15 }
 0xf82   : > { %v1569_v16 = vpop.eup %1568 }
 0xf83   : > { %923 = vrot.lane.b32.xlu1 %v1569_v16, %s1671_s23 }
 0xff5   : > { %v924_v18 = vpop.permute.xlu1 %923 }
 0xff6   : > { %v1920_v19 = vmul.f32 %v1567_v0, %v924_v18 }
 0xff8   : > { %v938_v20 = vpack.c.bf16 %v1920_v19, %v1920_v19 }
 0xffa   : > { %940 = vrot.lane.b32.xlu0 %v938_v20, %s1672_s24 }
0x106c   : > { %v941_v21 = vpop.permute.xlu0 %940 }
0x106d   : > { %1446 = vmatmul.mubr.msk.bf16.vlgmr.msra.gmra.mxu1 %vm440_vm3, %v941_v21 }
0x112d   : > { %v979_v23 = vpop.f32.mrf.mxu1 }
0x112e   : > { %v985_v24 = vadd.f32 %v1345_v22, %v979_v23 }
0x112f   : > { %v1447_v25 = vpop.f32.mrf.mxu1 }
0x1130   : > { %1570 = vtanh.f32 %v985_v24  ;;  %v1347_v29 = vmul.f32 -1.442695, %v985_v24 }
0x1131   : > { %v982_v26 = vpop.f32.mrf.mxu1 }
0x1132   : > { %1572 = vpow2.f32 %v1347_v29 }
0x1133   : > { %v1448_v27 = vpop.f32.mrf.mxu1 }
0x113d   : > { %v1571_v28 = vpop.eup %1570 }
0x113e   : > { %995 = vrot.lane.b32.xlu1 %v1571_v28, %s1671_s23 }
0x113f   : > { %v1573_v30 = vpop.eup %1572 }
0x1140   : > { %v989_v31 = vadd.f32 1.0, %v1573_v30 }
0x1142   : > { %1574 = vrcp.f32 %v989_v31 }
0x114f   : > { %v1575_v32 = vpop.eup %1574 }
0x1150   : > { %v993_v35 = vmul.f32 %v1575_v32, %v920_v15 }
0x11b0   : > { %v996_v33 = vpop.permute.xlu1 %995 }
0x11b1   : > { %v998_v34 = vmul.f32 %v1575_v32, %v996_v33 }
0x11b3   : > { %1000 = vrot.lane.b32.xlu0 %v998_v34, %s1672_s24 }
0x1225   : > { %v1001_v37 = vpop.permute.xlu0 %1000 }
0x1226   : > { %v1003_v38 = vadd.f32 %v1001_v37, %v993_v35 }
0x1228   : > { %1576 = vtanh.f32 %v1003_v38 }
0x1235   : > { %v1577_v40 = vpop.eup %1576 }
0x1236   : > { %1006 = vrot.lane.b32.xlu1 %v1577_v40, %s1671_s23 }
0x12a8   : > { %v1007_v41 = vpop.permute.xlu1 %1006 }
0x12a9   : > { %v1009_v42 = vmul.f32 %v1575_v32, %v1007_v41 }
0x12ab   : > { %v1021_v43 = vpack.c.bf16 %v1009_v42, %v1009_v42 }
0x12ad   : > { %1023 = vrot.lane.b32.xlu0 %v1021_v43, %s1672_s24 }
0x131f   : > { %v1024_v44 = vpop.permute.xlu0 %1023 }
0x1320   : > { %1454 = vmatmul.mubr.msk.bf16.vlgmr.msra.gmra.mxu0 %vm440_vm3, %v1024_v44 }
0x13e0   : > { %v1062_v46 = vpop.f32.mrf.mxu0 }
0x13e1   : > { %v1068_v47 = vadd.f32 %v1351_v45, %v1062_v46 }
0x13e2   : > { %v1455_v48 = vpop.f32.mrf.mxu0 }
0x13e3   : > { %1578 = vtanh.f32 %v1068_v47  ;;  %v1353_v52 = vmul.f32 -1.442695, %v1068_v47 }
0x13e4   : > { %v1065_v49 = vpop.f32.mrf.mxu0 }
0x13e5   : > { %1580 = vpow2.f32 %v1353_v52 }
0x13e6   : > { %v1456_v50 = vpop.f32.mrf.mxu0 }
0x13f0   : > { %v1579_v51 = vpop.eup %1578 }
0x13f1   : > { %1078 = vrot.lane.b32.xlu1 %v1579_v51, %s1671_s23 }
0x13f2   : > { %v1581_v53 = vpop.eup %1580 }
0x13f3   : > { %v1072_v54 = vadd.f32 1.0, %v1581_v53 }
0x13f5   : > { %1582 = vrcp.f32 %v1072_v54 }
0x1402   : > { %v1583_v55 = vpop.eup %1582 }
0x1403   : > { %v1076_v59 = vmul.f32 %v1583_v55, %v1003_v38 }
0x1463   : > { %v1079_v56 = vpop.permute.xlu1 %1078 }
0x1464   : > { %v1081_v58 = vmul.f32 %v1583_v55, %v1079_v56 }
0x1466   : > { %1083 = vrot.lane.b32.xlu0 %v1081_v58, %s1672_s24 }
0x146a   : > { %514 = vrot.lane.b32.xlu0 %v1831_v36, %s1672_s24 }
0x146e   : > { %681 = vrot.lane.b32.xlu0 %v1867_v17, %s1672_s24 }
0x1472   : > { %845 = vrot.lane.b32.xlu0 %v1903_v61, %s1672_s24 }
0x1476   : > { %1011 = vrot.lane.b32.xlu0 %v1009_v42, %s1672_s24 }
0x14d8   : > { %v1084_v60 = vpop.permute.xlu0 %1083 }
0x14d9   : > { %v1086_v62 = vadd.f32 %v1084_v60, %v1076_v59 }
0x14db   : > { %1584 = vtanh.f32 %v1086_v62  ;;  %1101 = vrot.lane.b32.xlu0 %v1086_v62, %s1673_s12 }
0x14dc   : > { %v515_v36 = vpop.permute.xlu0 %514 }
0x14dd   : > { %519 = vst.msk [vmem:[%s517_s10] sm:$0x3] %vm350_vm0, %v515_v36 }
0x14e0   : > { %v682_v61 = vpop.permute.xlu0 %681 }
0x14e4   : > { %v846_v63 = vpop.permute.xlu0 %845 }
0x14e8   : > { %v1585_v17 = vpop.eup %1584  ;;  %v1012_v1 = vpop.permute.xlu0 %1011 }
0x14e9   : > { %1089 = vrot.lane.b32.xlu1 %v1585_v17, %s1671_s23  ;;  %s848_s23 = scalar_lea.vmem %s1951_s8, %s1897_s9 }
0x14ed   : > { %598 = vrot.lane.b32.xlu1 %v1849_v57, %s1672_s24 }
0x14f1   : > { %763 = vrot.lane.b32.xlu1 %v1885_v39, %s1672_s24 }
0x14f5   : > { %928 = vrot.lane.b32.xlu1 %v1920_v19, %s1672_s24 }
0x154d   : > { %v1102_v2 = vpop.permute.xlu0 %1101 }
0x154e   : > { %1104 = vst.msk [vmem:[#allocation4] sm:$0x3] %vm350_vm0, %v1102_v2 }
0x155b   : > { %v1090_v3 = vpop.permute.xlu1 %1089 }
0x155c   : > { %v1092_v57 = vmul.f32 %v1583_v55, %v1090_v3 }
0x155e   : > { %1094 = vrot.lane.b32.xlu1 %v1092_v57, %s1672_s24  ;;  %s1236_s24 = scalar_lea.vmem %s1951_s8, %s1350_s21 }
0x155f   : > { %v599_v39 = vpop.permute.xlu1 %598 }
0x1560   : > { %1322 = vst.msk [vmem:[%s1194_s26 + $0x2] sm:$0x3] %vm350_vm0, %v599_v39 }
0x1561   : > { %1328 = vst.msk [vmem:[%s1202_s30 + $0x4] sm:$0x3] %vm350_vm0, %v682_v61 }
0x1563   : > { %v764_v4 = vpop.permute.xlu1 %763 }
0x1564   : > { %1334 = vst.msk [vmem:[%s1208_s15 + $0x6] sm:$0x3] %vm350_vm0, %v764_v4 }
0x1565   : > { %849 = vst.msk [vmem:[%s848_s23] sm:$0x3] %vm350_vm0, %v846_v63 }
0x1567   : > { %v929_v7 = vpop.permute.xlu1 %928 }
0x1568   : > { %1343 = vst.msk [vmem:[%s1220_s14 + $0xa] sm:$0x3] %vm350_vm0, %v929_v7 }
0x1569   : > { %1349 = vst.msk [vmem:[%s1228_s25 + $0xc] sm:$0x3] %vm350_vm0, %v1012_v1 }
0x15d0   : > { %v1095_v8 = vpop.permute.xlu1 %1094 }
0x15d1   : > { %1355 = vst.msk [vmem:[%s1236_s24 + $0xe] sm:$0x3] %vm350_vm0, %v1095_v8  ;;  %1099 = vst.msk [vmem:[#allocation3] sm:$0x3] %vm350_vm0, %v1095_v8 }
0x15d2 PF: > { %s17_s20 = sadd.s32 1, %s1664_s20   ;;  %s2020_s15 = smov %s1648_s16 }
0x15d3   : > { %p14_p7 = scmp.ge.s32.totalorder %s17_s20, 4   ;;  %s2021_s16 = smov %s1652_s17 }
0x15d4   : > { %s2022_s17 = smov %s1748_s27  ;;  %s2023_s18 = smov %s1660_s19 }
0x15d5   : > { %s2024_s19 = smov %s2026_s22  ;;  %16 = sbr.rel (!%p14_p7) target bundleno = 4 (0x4), region = 105 }
0x15da   :  { %1147 = vsyncpa [#allocation6], 1 }
0x15db   :  { %1149 = vsyncpa [#allocation6 + $0x1], 1 }

// kernel: xlstm_forward.4
= control target key start
LH: loop header
LB: loop body
LE: loop exit
PB: predicated region body
PF: predicated region fallthrough
CT: control target
= control target key end

     0   :  { %s1670_s15 = smov 0   ;;  %s1672_s16 = smov 0   ;;  %s1938_s0 = inlined_call_operand.vmem [shape: f32[2,16,32], index: 0, kind: input, shape index: {}]   ;;  %s1939_s1 = inlined_call_operand.vmem [shape: bf16[2,64,128], index: 1, kind: input, shape index: {}]   ;;  %s1940_s2 = inlined_call_operand.vmem [shape: bf16[2,32,128], index: 2, kind: input, shape index: {}]   ;;  %s1941_s3 = inlined_call_operand.vmem [shape: f32[2,1,128], index: 3, kind: input, shape index: {}]   ;;  %s1942_s4 = inlined_call_operand.vmem [shape: f32[2,16,32], index: 4, kind: output, shape index: {}]  }
   0x1   :  { %s1674_s17 = smov 0  }
   0x2 LB: > { %s26_s18 = sadd.s32 1, %s1634_s16  ;;  %p1343_p0 = scmp.ge.s32.totalorder %s1638_s17, 1  ;;  %s1638_s17 = sphi %s1674_s17, %s14_s17   ;;  %s1634_s16 = sphi %s1672_s16, %s1944_s16   ;;  %s1630_s15 = sphi %s1670_s15, %s1943_s15  }
   0x3   : > { %p28_p1 = scmp.ge.s32.totalorder %s26_s18, 2  ;;  %p229_p2 = scmp.lt.s32.totalorder %s1638_s17, 3 }
   0x5   : > { %s1946_s18 = smov (%p28_p1, %s26_s18), 0  ;;  %p230_p3 = pnand %p1343_p0, %p229_p2 }
   0x6   : > { %p294_p4 = scmp.lt.s32.totalorder (!%p230_p3), %s1630_s15, 1  ;;  %s478_s13 = smul.u32 (!%p230_p3), 14, %s1630_s15 }
   0x7   : > { %233 = sbr.rel (%p230_p3) target bundleno = 5567 (0x15bf), region = 36  ;;  %s1643_s21 = smov (!%p230_p3), 32  }
   0x8   : > { %s479_s14 = scalar_lea.vmem (!%p230_p3), [#allocation2], %s478_s13  ;;  %s1363_s22 = smul.u32 (!%p230_p3), 10, %s1630_s15 }
   0x9   : > { %s1369_s25 = smul.u32 (!%p230_p3), 6, %s1630_s15  ;;  %s1375_s27 = sshll.u32 (!%p230_p3), %s1630_s15, 1 }
   0xa   : > { %s1250_s28 = scalar_lea.vmem (!%p230_p3), [#allocation2], %s1375_s27  ;;  %s821_s29 = ssub.s32 (!%p230_p3), 4, %s1630_s15 }
   0xb   : > { %s1243_s26 = scalar_lea.vmem (!%p230_p3), [#allocation2], %s1369_s25  ;;  %s1832_s30 = sshll.u32 (!%p230_p3), %s821_s29, 1 }
   0xc   : > { %v1640_v0 = vmov 0.0   ;;  %vm330_vm0 = vcmask 254976   ;;  %s1694_s19 = scalar_select %p294_p4, %s1630_s15, 1  ;;  %vm1641_vm1 = vmmov 0   ;;  %v1350_v2 = vld [vmem:[%s1938_s0 + $0x10] sm:$0xff]  ;;  %v1351_v3 = vld [vmem:[%s1938_s0 + $0x18] sm:$0xff] }
   0xd   : > { %1437 = vmatprep.subr.bf16.mxu0 %v1640_v0  ;;  %1445 = vmatprep.subr.bf16.mxu1 %v1640_v0  ;;  %331 = vst.msk [vmem:[#allocation3] sm:$0x3] %vm330_vm0, %v1640_v0  ;;  %332 = vst.msk [vmem:[#allocation4] sm:$0x3] %vm330_vm0, %v1640_v0  ;;  %v333_v5 = vld [vmem:[%s1938_s0] sm:$0xff]  ;;  %v334_v6 = vld [vmem:[%s1938_s0 + $0x8] sm:$0xff]  ;;  %v343_v9 = vpack.c.bf16 %v1351_v3, %v1350_v2 }
   0xe   : > { %1441 = vmatprep.mubr.msk.bf16.mxu0 %vm1641_vm1, %v1640_v0  ;;  %1449 = vmatprep.mubr.msk.bf16.mxu1 %vm1641_vm1, %v1640_v0  ;;  %s1404_s20 = sshll.u32 %s1694_s19, 5  ;;  %s1405_s24 = sshll.u32 %s1694_s19, 4  ;;  %vm360_vm2 = vcmask 261120   ;;  %v335_v10 = vpack.c.bf16 %v334_v6, %v333_v5 }
   0xf   : > { %s298_s23 = scalar_lea.vmem %s1939_s1, %s1404_s20  ;;  %s303_s9 = scalar_lea.vmem %s1940_s2, %s1405_s24 }
  0x10   : > { %v1546_v1 = vld [vmem:[%s298_s23 + $0x18] sm:$0xff]   ;;  %v1547_v4 = vld [vmem:[%s298_s23 + $0x8] sm:$0xff]   ;;  %v1548_v7 = vld [vmem:[%s298_s23 + $0x10] sm:$0xff]   ;;  %s306_s12 = scalar_lea.vmem %s1941_s3, %s1694_s19  ;;  %s1642_s20 = smov 64  }
  0x11   : > { %1438 = vmatpush3.bf16.msra.mxu0 %v1546_v1  ;;  %1446 = vmatpush3.bf16.msra.mxu1 %v1547_v4  ;;  %v1549_v8 = vld [vmem:[%s298_s23] sm:$0xff]   ;;  %v1728_v11 = vld [vmem:[%s303_s9 + $0x8] sm:$0xff]   ;;  %s1235_s23 = scalar_lea.vmem [#allocation2], %s1363_s22  ;;  %s823_s5 = scalar_lea.vmem [#allocation2], %s1832_s30 }
  0x12   : > { %1439 = vmatprep.subr.bf16.mxu0 %v1640_v0  ;;  %1447 = vmatprep.subr.bf16.mxu1 %v1640_v0  ;;  %v1735_v12 = vld [vmem:[%s303_s9] sm:$0xff]   ;;  %s1384_s6 = smul.u32 4294967290, %s1630_s15 }
  0x13   : > { %v1358_v17 = vld [vmem:[%s306_s12] ss:$0 sm:$0xff]  ;;  %s1390_s8 = smul.u32 4294967286, %s1630_s15 }
  0x14   : > { %v476_v13 = vld [vmem:[#allocation3] sm:$0x3]  ;;  %v477_v35 = vld [vmem:[#allocation4] sm:$0x3]  ;;  %s1261_s7 = scalar_lea.vmem [#allocation2], %s1384_s6  ;;  %s1396_s10 = smul.u32 4294967282, %s1630_s15 }
  0x15   : > { %1440 = vmatpush3.bf16.msra.mxu0 %v1548_v7  ;;  %1448 = vmatpush3.bf16.msra.mxu1 %v1549_v8  ;;  %v481_v14 = vpack.c.bf16 %v476_v13, %v476_v13  ;;  %s1269_s9 = scalar_lea.vmem [#allocation2], %s1390_s8 }
  0x16   : > { %1453 = vmatprep.subr.bf16.mxu0 %v1640_v0  ;;  %1461 = vmatprep.subr.bf16.mxu1 %v1640_v0  ;;  %s1277_s11 = scalar_lea.vmem [#allocation2], %s1396_s10 }
  0x18   : > { %1442 = vmatmul.mubr.msk.bf16.vlgmr.msra.gmra.mxu0 %vm360_vm2, %v343_v9  ;;  %1450 = vmatmul.mubr.msk.bf16.vlgmr.msra.gmra.mxu1 %vm360_vm2, %v335_v10 }
  0x19   : > { %1454 = vmatpush3.bf16.msra.mxu0 %v1728_v11  ;;  %1457 = vmatprep.mubr.msk.bf16.mxu0 %vm1641_vm1, %v1640_v0 }
  0x1a   : > { %1455 = vmatprep.subr.bf16.mxu0 %v1640_v0  ;;  %1462 = vmatpush3.bf16.msra.mxu1 %v1728_v11 }
  0x1b   : > { %1465 = vmatprep.mubr.msk.bf16.mxu1 %vm1641_vm1, %v1640_v0  ;;  %1463 = vmatprep.subr.bf16.mxu1 %v1640_v0 }
  0x1d   : > { %1456 = vmatpush3.bf16.msra.mxu0 %v1735_v12 }
  0x1e   : > { %1469 = vmatprep.subr.bf16.mxu0 %v1640_v0  ;;  %1464 = vmatpush3.bf16.msra.mxu1 %v1735_v12 }
  0x1f   : > { %1477 = vmatprep.subr.bf16.mxu1 %v1640_v0 }
  0x20   : > { %1458 = vmatmul.mubr.msk.bf16.vlgmr.msra.gmra.mxu0 %vm360_vm2, %v481_v14 }
  0x21   : > { %1470 = vmatpush3.bf16.msra.mxu0 %v1728_v11  ;;  %1473 = vmatprep.mubr.msk.bf16.mxu0 %vm1641_vm1, %v1640_v0 }
  0x22   : > { %1471 = vmatprep.subr.bf16.mxu0 %v1640_v0 }
  0x25   : > { %1472 = vmatpush3.bf16.msra.mxu0 %v1735_v12 }
  0x26   : > { %1485 = vmatprep.subr.bf16.mxu0 %v1640_v0 }
  0xd8   : > { %v398_v15 = vpop.f32.mrf.mxu0  ;;  %v454_v16 = vpop.f32.mrf.mxu1 }
  0xd9   : > { %v455_v18 = vadd.f32 %v454_v16, %v398_v15 }
  0xda   : > { %v1443_v19 = vpop.f32.mrf.mxu0  ;;  %v1451_v20 = vpop.f32.mrf.mxu1 }
  0xdb   : > { %v468_v21 = vadd.f32 %v1358_v17, %v455_v18 }
  0xdc   : > { %v401_v22 = vpop.f32.mrf.mxu0  ;;  %v457_v23 = vpop.f32.mrf.mxu1 }
  0xdd   : > { %470 = vst [vmem:[#allocation2] sm:$0xff] %v468_v21  ;;  %v458_v24 = vadd.f32 %v457_v23, %v401_v22 }
  0xde   : > { %v1444_v25 = vpop.f32.mrf.mxu0  ;;  %v1452_v26 = vpop.f32.mrf.mxu1 }
  0xdf   : > { %v469_v27 = vadd.f32 %v1358_v17, %v458_v24 }
  0xe0   : > { %v531_v28 = vpop.f32.mrf.mxu0 }
  0xe1   : > { %471 = vst [vmem:[#allocation2 + $0x8] sm:$0xff] %v469_v27 }
  0xe2   : > { %v1459_v29 = vpop.f32.mrf.mxu0 }
  0xe4   : > { %v534_v30 = vpop.f32.mrf.mxu0 }
  0xe6   : > { %v1460_v31 = vpop.f32.mrf.mxu0 }
  0xe8   : > { %v480_v32 = vld [vmem:[%s479_s14] sm:$0x3]  ;;  %v1364_v51 = vld [vmem:[%s1235_s23 + $0x2] sm:$0x3]  ;;  %v1370_v9 = vld [vmem:[%s1243_s26 + $0x4] sm:$0x3]  ;;  %s1886_s23 = scalar_lea.vmem %s1942_s4, %s1405_s24 }
  0xe9   : > { %v537_v33 = vadd.f32 %v531_v28, %v480_v32  ;;  %v1376_v32 = vld [vmem:[%s1250_s28 + $0x6] sm:$0x3]  ;;  %s570_s26 = scalar_lea.vmem %s1886_s23, %s478_s13  ;;  %s1644_s28 = smov 96  }
  0xea   : > { %s1239_s19 = scalar_lea.vmem %s1886_s23, %s1363_s22  ;;  %s1247_s24 = scalar_lea.vmem %s1886_s23, %s1369_s25 }
  0xeb   : > { %1552 = vtanh.f32 %v537_v33  ;;  %v1362_v36 = vmul.f32 -1.442695, %v537_v33  ;;  %s1253_s13 = scalar_lea.vmem %s1886_s23, %s1375_s27  ;;  %s1265_s29 = scalar_lea.vmem %s1886_s23, %s1384_s6 }
  0xec   : > { %s1273_s22 = scalar_lea.vmem %s1886_s23, %s1390_s8 }
  0xed   : > { %1554 = vpow2.f32 %v1362_v36 }
  0xf8   : > { %v1553_v34 = vpop.eup %1552 }
  0xf9   : > { %551 = vrot.lane.b32.xlu0 %v1553_v34, %s1642_s20 }
  0xfa   : > { %v1555_v37 = vpop.eup %1554 }
  0xfb   : > { %v541_v38 = vadd.f32 1.0, %v1555_v37 }
  0xfd   : > { %546 = vrot.lane.b32.xlu0 %v477_v35, %s1643_s21  ;;  %1556 = vrcp.f32 %v541_v38 }
 0x10a   : > { %v1557_v39 = vpop.eup %1556 }
 0x16b   : > { %v552_v40 = vpop.permute.xlu0 %551 }
 0x16c   : > { %v554_v41 = vmul.f32 %v1557_v39, %v552_v40 }
 0x16e   : > { %556 = vrot.lane.b32.xlu1 %v554_v41, %s1643_s21 }
 0x16f   : > { %v547_v42 = vpop.permute.xlu0 %546 }
 0x170   : > { %v549_v43 = vmul.f32 %v1557_v39, %v547_v42 }
 0x1e0   : > { %v557_v44 = vpop.permute.xlu1 %556 }
 0x1e1   : > { %v559_v45 = vadd.f32 %v557_v44, %v549_v43 }
 0x1e3   : > { %1558 = vtanh.f32 %v559_v45 }
 0x1f0   : > { %v1559_v46 = vpop.eup %1558 }
 0x1f1   : > { %562 = vrot.lane.b32.xlu1 %v1559_v46, %s1642_s20 }
 0x263   : > { %v563_v47 = vpop.permute.xlu1 %562 }
 0x264   : > { %v1766_v48 = vmul.f32 %v1557_v39, %v563_v47 }
 0x266   : > { %v578_v49 = vpack.c.bf16 %v1766_v48, %v1766_v48 }
 0x268   : > { %580 = vrot.lane.b32.xlu0 %v578_v49, %s1643_s21 }
 0x2da   : > { %v581_v50 = vpop.permute.xlu0 %580 }
 0x2db   : > { %1466 = vmatmul.mubr.msk.bf16.vlgmr.msra.gmra.mxu1 %vm360_vm2, %v581_v50 }
 0x2dc   : > { %1478 = vmatpush3.bf16.msra.mxu1 %v1728_v11  ;;  %1481 = vmatprep.mubr.msk.bf16.mxu1 %vm1641_vm1, %v1640_v0 }
 0x2dd   : > { %1479 = vmatprep.subr.bf16.mxu1 %v1640_v0 }
 0x2e0   : > { %1480 = vmatpush3.bf16.msra.mxu1 %v1735_v12 }
 0x2e1   : > { %1493 = vmatprep.subr.bf16.mxu1 %v1640_v0 }
 0x39b   : > { %v619_v52 = vpop.f32.mrf.mxu1 }
 0x39c   : > { %v625_v53 = vadd.f32 %v1364_v51, %v619_v52 }
 0x39d   : > { %v1467_v54 = vpop.f32.mrf.mxu1 }
 0x39e   : > { %1560 = vtanh.f32 %v625_v53  ;;  %v1366_v58 = vmul.f32 -1.442695, %v625_v53  ;;  %v824_v54 = vld [vmem:[%s823_s5] sm:$0x3] }
 0x39f   : > { %v622_v55 = vpop.f32.mrf.mxu1 }
 0x3a0   : > { %1562 = vpow2.f32 %v1366_v58 }
 0x3a1   : > { %v1468_v56 = vpop.f32.mrf.mxu1 }
 0x3ab   : > { %v1561_v57 = vpop.eup %1560 }
 0x3ac   : > { %635 = vrot.lane.b32.xlu1 %v1561_v57, %s1642_s20 }
 0x3ad   : > { %v1563_v59 = vpop.eup %1562 }
 0x3ae   : > { %v629_v60 = vadd.f32 1.0, %v1563_v59 }
 0x3b0   : > { %1564 = vrcp.f32 %v629_v60 }
 0x3bd   : > { %v1565_v61 = vpop.eup %1564 }
 0x3be   : > { %v633_v1 = vmul.f32 %v1565_v61, %v559_v45 }
 0x41e   : > { %v636_v62 = vpop.permute.xlu1 %635 }
 0x41f   : > { %v638_v63 = vmul.f32 %v1565_v61, %v636_v62 }
 0x421   : > { %640 = vrot.lane.b32.xlu0 %v638_v63, %s1643_s21 }
 0x493   : > { %v641_v2 = vpop.permute.xlu0 %640 }
 0x494   : > { %v643_v3 = vadd.f32 %v641_v2, %v633_v1 }
 0x496   : > { %1566 = vtanh.f32 %v643_v3 }
 0x4a3   : > { %v1567_v4 = vpop.eup %1566 }
 0x4a4   : > { %646 = vrot.lane.b32.xlu1 %v1567_v4, %s1642_s20 }
 0x516   : > { %v647_v5 = vpop.permute.xlu1 %646 }
 0x517   : > { %v1784_v6 = vmul.f32 %v1565_v61, %v647_v5 }
 0x519   : > { %v661_v7 = vpack.c.bf16 %v1784_v6, %v1784_v6 }
 0x51b   : > { %663 = vrot.lane.b32.xlu0 %v661_v7, %s1643_s21 }
 0x58d   : > { %v664_v8 = vpop.permute.xlu0 %663 }
 0x58e   : > { %1474 = vmatmul.mubr.msk.bf16.vlgmr.msra.gmra.mxu0 %vm360_vm2, %v664_v8 }
 0x58f   : > { %1486 = vmatpush3.bf16.msra.mxu0 %v1728_v11  ;;  %1489 = vmatprep.mubr.msk.bf16.mxu0 %vm1641_vm1, %v1640_v0 }
 0x590   : > { %1487 = vmatprep.subr.bf16.mxu0 %v1640_v0 }
 0x593   : > { %1488 = vmatpush3.bf16.msra.mxu0 %v1735_v12 }
 0x594   : > { %1501 = vmatprep.subr.bf16.mxu0 %v1640_v0 }
 0x64e   : > { %v702_v10 = vpop.f32.mrf.mxu0 }
 0x64f   : > { %v708_v13 = vadd.f32 %v1370_v9, %v702_v10 }
 0x650   : > { %v1475_v14 = vpop.f32.mrf.mxu0 }
 0x651   : > { %1568 = vtanh.f32 %v708_v13  ;;  %v1372_v18 = vmul.f32 -1.442695, %v708_v13 }
 0x652   : > { %v705_v15 = vpop.f32.mrf.mxu0 }
 0x653   : > { %1570 = vpow2.f32 %v1372_v18  ;;  %v1385_v15 = vld [vmem:[%s1261_s7 + $0xa] sm:$0x3] }
 0x654   : > { %v1476_v16 = vpop.f32.mrf.mxu0 }
 0x65e   : > { %v1569_v17 = vpop.eup %1568 }
 0x65f   : > { %718 = vrot.lane.b32.xlu1 %v1569_v17, %s1642_s20 }
 0x660   : > { %v1571_v19 = vpop.eup %1570 }
 0x661   : > { %v712_v20 = vadd.f32 1.0, %v1571_v19 }
 0x663   : > { %1572 = vrcp.f32 %v712_v20 }
 0x670   : > { %v1573_v21 = vpop.eup %1572 }
 0x671   : > { %v716_v24 = vmul.f32 %v1573_v21, %v643_v3 }
 0x6d1   : > { %v719_v22 = vpop.permute.xlu1 %718 }
 0x6d2   : > { %v721_v23 = vmul.f32 %v1573_v21, %v719_v22 }
 0x6d4   : > { %723 = vrot.lane.b32.xlu0 %v721_v23, %s1643_s21 }
 0x746   : > { %v724_v25 = vpop.permute.xlu0 %723 }
 0x747   : > { %v726_v26 = vadd.f32 %v724_v25, %v716_v24 }
 0x749   : > { %1574 = vtanh.f32 %v726_v26 }
 0x756   : > { %v1575_v27 = vpop.eup %1574 }
 0x757   : > { %729 = vrot.lane.b32.xlu1 %v1575_v27, %s1642_s20 }
 0x7c9   : > { %v730_v28 = vpop.permute.xlu1 %729 }
 0x7ca   : > { %v1802_v29 = vmul.f32 %v1573_v21, %v730_v28 }
 0x7cc   : > { %v743_v30 = vpack.c.bf16 %v1802_v29, %v1802_v29 }
 0x7ce   : > { %745 = vrot.lane.b32.xlu0 %v743_v30, %s1643_s21 }
 0x840   : > { %v746_v31 = vpop.permute.xlu0 %745 }
 0x841   : > { %1482 = vmatmul.mubr.msk.bf16.vlgmr.msra.gmra.mxu1 %vm360_vm2, %v746_v31 }
 0x842   : > { %1494 = vmatpush3.bf16.msra.mxu1 %v1728_v11  ;;  %1497 = vmatprep.mubr.msk.bf16.mxu1 %vm1641_vm1, %v1640_v0 }
 0x843   : > { %1495 = vmatprep.subr.bf16.mxu1 %v1640_v0 }
 0x846   : > { %1496 = vmatpush3.bf16.msra.mxu1 %v1735_v12 }
 0x847   : > { %1509 = vmatprep.subr.bf16.mxu1 %v1640_v0 }
 0x901   : > { %v784_v33 = vpop.f32.mrf.mxu1 }
 0x902   : > { %v790_v34 = vadd.f32 %v1376_v32, %v784_v33 }
 0x903   : > { %v1483_v35 = vpop.f32.mrf.mxu1 }
 0x904   : > { %1576 = vtanh.f32 %v790_v34  ;;  %v1378_v39 = vmul.f32 -1.442695, %v790_v34  ;;  %v1391_v34 = vld [vmem:[%s1269_s9 + $0xc] sm:$0x3] }
 0x905   : > { %v787_v36 = vpop.f32.mrf.mxu1 }
 0x906   : > { %1578 = vpow2.f32 %v1378_v39 }
 0x907   : > { %v1484_v37 = vpop.f32.mrf.mxu1 }
 0x911   : > { %v1577_v38 = vpop.eup %1576 }
 0x912   : > { %800 = vrot.lane.b32.xlu1 %v1577_v38, %s1642_s20 }
 0x913   : > { %v1579_v40 = vpop.eup %1578 }
 0x914   : > { %v794_v41 = vadd.f32 1.0, %v1579_v40 }
 0x916   : > { %1580 = vrcp.f32 %v794_v41 }
 0x923   : > { %v1581_v42 = vpop.eup %1580 }
 0x924   : > { %v798_v45 = vmul.f32 %v1581_v42, %v726_v26 }
 0x984   : > { %v801_v43 = vpop.permute.xlu1 %800 }
 0x985   : > { %v803_v44 = vmul.f32 %v1581_v42, %v801_v43 }
 0x987   : > { %805 = vrot.lane.b32.xlu0 %v803_v44, %s1643_s21 }
 0x9f9   : > { %v806_v46 = vpop.permute.xlu0 %805 }
 0x9fa   : > { %v808_v47 = vadd.f32 %v806_v46, %v798_v45 }
 0x9fc   : > { %1582 = vtanh.f32 %v808_v47 }
 0xa09   : > { %v1583_v49 = vpop.eup %1582 }
 0xa0a   : > { %811 = vrot.lane.b32.xlu1 %v1583_v49, %s1642_s20 }
 0xa7c   : > { %v812_v50 = vpop.permute.xlu1 %811 }
 0xa7d   : > { %v1820_v51 = vmul.f32 %v1581_v42, %v812_v50 }
 0xa7f   : > { %v825_v52 = vpack.c.bf16 %v1820_v51, %v1820_v51 }
 0xa81   : > { %827 = vrot.lane.b32.xlu0 %v825_v52, %s1643_s21 }
 0xaf3   : > { %v828_v53 = vpop.permute.xlu0 %827 }
 0xaf4   : > { %1490 = vmatmul.mubr.msk.bf16.vlgmr.msra.gmra.mxu0 %vm360_vm2, %v828_v53 }
 0xaf5   : > { %1502 = vmatpush3.bf16.msra.mxu0 %v1728_v11  ;;  %1505 = vmatprep.mubr.msk.bf16.mxu0 %vm1641_vm1, %v1640_v0 }
 0xaf6   : > { %1503 = vmatprep.subr.bf16.mxu0 %v1640_v0 }
 0xaf9   : > { %1504 = vmatpush3.bf16.msra.mxu0 %v1735_v12 }
 0xbb4   : > { %v866_v55 = vpop.f32.mrf.mxu0 }
 0xbb5   : > { %v872_v56 = vadd.f32 %v866_v55, %v824_v54 }
 0xbb6   : > { %v1491_v57 = vpop.f32.mrf.mxu0 }
 0xbb7   : > { %1584 = vtanh.f32 %v872_v56  ;;  %v1383_v61 = vmul.f32 -1.442695, %v872_v56  ;;  %v1397_v57 = vld [vmem:[%s1277_s11 + $0xe] sm:$0x3] }
 0xbb8   : > { %v869_v58 = vpop.f32.mrf.mxu0 }
 0xbb9   : > { %1586 = vpow2.f32 %v1383_v61 }
 0xbba   : > { %v1492_v59 = vpop.f32.mrf.mxu0 }
 0xbc4   : > { %v1585_v60 = vpop.eup %1584 }
 0xbc5   : > { %882 = vrot.lane.b32.xlu1 %v1585_v60, %s1642_s20 }
 0xbc6   : > { %v1587_v62 = vpop.eup %1586 }
 0xbc7   : > { %v876_v63 = vadd.f32 1.0, %v1587_v62 }
 0xbc9   : > { %1588 = vrcp.f32 %v876_v63 }
 0xbd6   : > { %v1589_v1 = vpop.eup %1588 }
 0xbd7   : > { %v880_v4 = vmul.f32 %v1589_v1, %v808_v47 }
 0xc37   : > { %v883_v2 = vpop.permute.xlu1 %882 }
 0xc38   : > { %v885_v3 = vmul.f32 %v1589_v1, %v883_v2 }
 0xc3a   : > { %887 = vrot.lane.b32.xlu0 %v885_v3, %s1643_s21 }
 0xcac   : > { %v888_v5 = vpop.permute.xlu0 %887 }
 0xcad   : > { %v890_v7 = vadd.f32 %v888_v5, %v880_v4 }
 0xcaf   : > { %1590 = vtanh.f32 %v890_v7 }
 0xcbc   : > { %v1591_v8 = vpop.eup %1590 }
 0xcbd   : > { %893 = vrot.lane.b32.xlu1 %v1591_v8, %s1642_s20 }
 0xd2f   : > { %v894_v9 = vpop.permute.xlu1 %893 }
 0xd30   : > { %v1838_v10 = vmul.f32 %v1589_v1, %v894_v9 }
 0xd32   : > { %v908_v13 = vpack.c.bf16 %v1838_v10, %v1838_v10 }
 0xd34   : > { %910 = vrot.lane.b32.xlu0 %v908_v13, %s1643_s21 }
 0xda6   : > { %v911_v14 = vpop.permute.xlu0 %910 }
 0xda7   : > { %1498 = vmatmul.mubr.msk.bf16.vlgmr.msra.gmra.mxu1 %vm360_vm2, %v911_v14 }
 0xda8   : > { %1510 = vmatpush3.bf16.msra.mxu1 %v1728_v11  ;;  %1513 = vmatprep.mubr.msk.bf16.mxu1 %vm1641_vm1, %v1640_v0 }
 0xda9   : > { %1511 = vmatprep.subr.bf16.mxu1 %v1640_v0 }
 0xdac   : > { %1512 = vmatpush3.bf16.msra.mxu1 %v1735_v12 }
 0xe67   : > { %v949_v16 = vpop.f32.mrf.mxu1 }
 0xe68   : > { %v955_v17 = vadd.f32 %v1385_v15, %v949_v16 }
 0xe69   : > { %v1499_v18 = vpop.f32.mrf.mxu1 }
 0xe6a   : > { %1592 = vtanh.f32 %v955_v17  ;;  %v1387_v11 = vmul.f32 -1.442695, %v955_v17 }
 0xe6b   : > { %v952_v19 = vpop.f32.mrf.mxu1 }
 0xe6c   : > { %1594 = vpow2.f32 %v1387_v11 }
 0xe6d   : > { %v1500_v20 = vpop.f32.mrf.mxu1 }
 0xe77   : > { %v1593_v21 = vpop.eup %1592 }
 0xe78   : > { %965 = vrot.lane.b32.xlu1 %v1593_v21, %s1642_s20 }
 0xe79   : > { %v1595_v22 = vpop.eup %1594 }
 0xe7a   : > { %v959_v23 = vadd.f32 1.0, %v1595_v22 }
 0xe7c   : > { %1596 = vrcp.f32 %v959_v23 }
 0xe89   : > { %v1597_v0 = vpop.eup %1596 }
 0xe8a   : > { %v963_v25 = vmul.f32 %v1597_v0, %v890_v7 }
 0xeea   : > { %v966_v12 = vpop.permute.xlu1 %965 }
 0xeeb   : > { %v968_v24 = vmul.f32 %v1597_v0, %v966_v12 }
 0xeed   : > { %970 = vrot.lane.b32.xlu0 %v968_v24, %s1643_s21 }
 0xf5f   : > { %v971_v26 = vpop.permute.xlu0 %970 }
 0xf60   : > { %v973_v27 = vadd.f32 %v971_v26, %v963_v25 }
 0xf62   : > { %1598 = vtanh.f32 %v973_v27 }
 0xf6f   : > { %v1599_v28 = vpop.eup %1598 }
 0xf70   : > { %976 = vrot.lane.b32.xlu1 %v1599_v28, %s1642_s20 }
 0xfe2   : > { %v977_v30 = vpop.permute.xlu1 %976 }
 0xfe3   : > { %v1855_v31 = vmul.f32 %v1597_v0, %v977_v30 }
 0xfe5   : > { %v991_v32 = vpack.c.bf16 %v1855_v31, %v1855_v31 }
 0xfe7   : > { %993 = vrot.lane.b32.xlu0 %v991_v32, %s1643_s21 }
0x1059   : > { %v994_v33 = vpop.permute.xlu0 %993 }
0x105a   : > { %1506 = vmatmul.mubr.msk.bf16.vlgmr.msra.gmra.mxu0 %vm360_vm2, %v994_v33 }
0x111a   : > { %v1032_v35 = vpop.f32.mrf.mxu0 }
0x111b   : > { %v1038_v36 = vadd.f32 %v1391_v34, %v1032_v35 }
0x111c   : > { %v1507_v37 = vpop.f32.mrf.mxu0 }
0x111d   : > { %1600 = vtanh.f32 %v1038_v36  ;;  %v1393_v41 = vmul.f32 -1.442695, %v1038_v36 }
0x111e   : > { %v1035_v38 = vpop.f32.mrf.mxu0 }
0x111f   : > { %1602 = vpow2.f32 %v1393_v41 }
0x1120   : > { %v1508_v39 = vpop.f32.mrf.mxu0 }
0x112a   : > { %v1601_v40 = vpop.eup %1600 }
0x112b   : > { %1048 = vrot.lane.b32.xlu1 %v1601_v40, %s1642_s20 }
0x112c   : > { %v1603_v42 = vpop.eup %1602 }
0x112d   : > { %v1042_v43 = vadd.f32 1.0, %v1603_v42 }
0x112f   : > { %1604 = vrcp.f32 %v1042_v43 }
0x113c   : > { %v1605_v44 = vpop.eup %1604 }
0x113d   : > { %v1046_v47 = vmul.f32 %v1605_v44, %v973_v27 }
0x119d   : > { %v1049_v45 = vpop.permute.xlu1 %1048 }
0x119e   : > { %v1051_v46 = vmul.f32 %v1605_v44, %v1049_v45 }
0x11a0   : > { %1053 = vrot.lane.b32.xlu0 %v1051_v46, %s1643_s21 }
0x1212   : > { %v1054_v49 = vpop.permute.xlu0 %1053 }
0x1213   : > { %v1056_v50 = vadd.f32 %v1054_v49, %v1046_v47 }
0x1215   : > { %1606 = vtanh.f32 %v1056_v50 }
0x1222   : > { %v1607_v52 = vpop.eup %1606 }
0x1223   : > { %1059 = vrot.lane.b32.xlu1 %v1607_v52, %s1642_s20 }
0x1295   : > { %v1060_v53 = vpop.permute.xlu1 %1059 }
0x1296   : > { %v1062_v54 = vmul.f32 %v1605_v44, %v1060_v53 }
0x1298   : > { %v1074_v55 = vpack.c.bf16 %v1062_v54, %v1062_v54 }
0x129a   : > { %1076 = vrot.lane.b32.xlu0 %v1074_v55, %s1643_s21 }
0x130c   : > { %v1077_v56 = vpop.permute.xlu0 %1076 }
0x130d   : > { %1514 = vmatmul.mubr.msk.bf16.vlgmr.msra.gmra.mxu1 %vm360_vm2, %v1077_v56 }
0x13cd   : > { %v1115_v58 = vpop.f32.mrf.mxu1 }
0x13ce   : > { %v1121_v59 = vadd.f32 %v1397_v57, %v1115_v58 }
0x13cf   : > { %v1515_v60 = vpop.f32.mrf.mxu1 }
0x13d0   : > { %1608 = vtanh.f32 %v1121_v59  ;;  %v1399_v1 = vmul.f32 -1.442695, %v1121_v59 }
0x13d1   : > { %v1118_v61 = vpop.f32.mrf.mxu1 }
0x13d2   : > { %1610 = vpow2.f32 %v1399_v1 }
0x13d3   : > { %v1516_v62 = vpop.f32.mrf.mxu1 }
0x13dd   : > { %v1609_v63 = vpop.eup %1608 }
0x13de   : > { %1131 = vrot.lane.b32.xlu1 %v1609_v63, %s1642_s20 }
0x13df   : > { %v1611_v2 = vpop.eup %1610 }
0x13e0   : > { %v1125_v3 = vadd.f32 1.0, %v1611_v2 }
0x13e2   : > { %1612 = vrcp.f32 %v1125_v3 }
0x13ef   : > { %v1613_v4 = vpop.eup %1612 }
0x13f0   : > { %v1129_v8 = vmul.f32 %v1613_v4, %v1056_v50 }
0x1450   : > { %v1132_v5 = vpop.permute.xlu1 %1131 }
0x1451   : > { %v1134_v7 = vmul.f32 %v1613_v4, %v1132_v5 }
0x1453   : > { %1136 = vrot.lane.b32.xlu0 %v1134_v7, %s1643_s21 }
0x1457   : > { %567 = vrot.lane.b32.xlu0 %v1766_v48, %s1643_s21 }
0x145b   : > { %734 = vrot.lane.b32.xlu0 %v1802_v29, %s1643_s21 }
0x145f   : > { %898 = vrot.lane.b32.xlu0 %v1838_v10, %s1643_s21 }
0x1463   : > { %1064 = vrot.lane.b32.xlu0 %v1062_v54, %s1643_s21 }
0x14c5   : > { %v1137_v9 = vpop.permute.xlu0 %1136 }
0x14c6   : > { %v1139_v13 = vadd.f32 %v1137_v9, %v1129_v8 }
0x14c8   : > { %1614 = vtanh.f32 %v1139_v13  ;;  %1154 = vrot.lane.b32.xlu0 %v1139_v13, %s1644_s28 }
0x14c9   : > { %v568_v48 = vpop.permute.xlu0 %567 }
0x14ca   : > { %572 = vst.msk [vmem:[%s570_s26] sm:$0x3] %vm330_vm0, %v568_v48 }
0x14cd   : > { %v735_v10 = vpop.permute.xlu0 %734 }
0x14d1   : > { %v899_v14 = vpop.permute.xlu0 %898 }
0x14d5   : > { %v1615_v29 = vpop.eup %1614  ;;  %v1065_v15 = vpop.permute.xlu0 %1064 }
0x14d6   : > { %1142 = vrot.lane.b32.xlu1 %v1615_v29, %s1642_s20  ;;  %s901_s20 = scalar_lea.vmem %s1886_s23, %s1832_s30 }
0x14da   : > { %651 = vrot.lane.b32.xlu1 %v1784_v6, %s1643_s21 }
0x14de   : > { %816 = vrot.lane.b32.xlu1 %v1820_v51, %s1643_s21 }
0x14e2   : > { %981 = vrot.lane.b32.xlu1 %v1855_v31, %s1643_s21 }
0x153a   : > { %v1155_v16 = vpop.permute.xlu0 %1154 }
0x153b   : > { %1157 = vst.msk [vmem:[#allocation4] sm:$0x3] %vm330_vm0, %v1155_v16 }
0x1548   : > { %v1143_v17 = vpop.permute.xlu1 %1142 }
0x1549   : > { %v1145_v6 = vmul.f32 %v1613_v4, %v1143_v17 }
0x154b   : > { %1147 = vrot.lane.b32.xlu1 %v1145_v6, %s1643_s21  ;;  %s1281_s21 = scalar_lea.vmem %s1886_s23, %s1396_s10 }
0x154c   : > { %v652_v51 = vpop.permute.xlu1 %651 }
0x154d   : > { %1368 = vst.msk [vmem:[%s1239_s19 + $0x2] sm:$0x3] %vm330_vm0, %v652_v51 }
0x154e   : > { %1374 = vst.msk [vmem:[%s1247_s24 + $0x4] sm:$0x3] %vm330_vm0, %v735_v10 }
0x1550   : > { %v817_v18 = vpop.permute.xlu1 %816 }
0x1551   : > { %1380 = vst.msk [vmem:[%s1253_s13 + $0x6] sm:$0x3] %vm330_vm0, %v817_v18 }
0x1552   : > { %902 = vst.msk [vmem:[%s901_s20] sm:$0x3] %vm330_vm0, %v899_v14 }
0x1554   : > { %v982_v19 = vpop.permute.xlu1 %981 }
0x1555   : > { %1389 = vst.msk [vmem:[%s1265_s29 + $0xa] sm:$0x3] %vm330_vm0, %v982_v19 }
0x1556   : > { %1395 = vst.msk [vmem:[%s1273_s22 + $0xc] sm:$0x3] %vm330_vm0, %v1065_v15 }
0x15bd   : > { %v1148_v20 = vpop.permute.xlu1 %1147 }
0x15be   : > { %1401 = vst.msk [vmem:[%s1281_s21 + $0xe] sm:$0x3] %vm330_vm0, %v1148_v20  ;;  %1152 = vst.msk [vmem:[#allocation3] sm:$0x3] %vm330_vm0, %v1148_v20 }
0x15bf PF: > { %s14_s17 = sadd.s32 1, %s1638_s17   ;;  %s1943_s15 = smov %s1634_s16 }
0x15c0   : > { %p11_p5 = scmp.ge.s32.totalorder %s14_s17, 4   ;;  %s1944_s16 = smov %s1946_s18 }
0x15c2   :  { %13 = sbr.rel (!%p11_p5) target bundleno = 2 (0x2), region = 96 }

</bundles_post_ra>
